<compile_context>
chip_gen: v5e
topology: v5e:2x2
jax: 0.10.0
libtpu: 0.0.40
codegen_flags: <defaults>
</compile_context>

<pallas_src>
import jax
import jax.numpy as jnp
from jax.experimental import pallas as pl
from jax.experimental.pallas import tpu as pltpu


def _round_up(x: int, m: int) -> int:
    return ((x + m - 1) // m) * m


def _pad2(a, rows: int, cols: int, dtype):
    """Cast + zero-pad a 2-D array up to (rows, cols); no copy if already sized."""
    a = a.astype(dtype)
    r, c = a.shape
    if r == rows and c == cols:
        return a
    return jnp.pad(a, ((0, rows - r), (0, cols - c)))


def _default_bf16() -> bool:
    try:
        kind = jax.devices()[0].device_kind.lower()
    except Exception:  # pragma: no cover - CPU/interpret fallback
        return False
    return ("v6" in kind) or ("v7" in kind)


def gradient_output(x, w1, b1, w2, b2, *, sign=1.0, tile_n=512,
                    use_bf16_matmul=None, vmem_budget_bytes=20 * 1024 * 1024):
    """Fused forward + analytic gradient of sum(y) wrt x.

    y_n    = tanh(x_n @ W1 + b1) @ w2 + b2                (per-node scalar)
    grad_n = sign * ((1 - tanh(h_n)^2) * w2^T) @ W1^T     (= sign * d(sum y)/dx_n)
    """
    sign = float(sign)
    assert sign in (1.0, -1.0)
    N, D = x.shape
    Dw, H = w1.shape
    assert Dw == D and w2.shape == (H, 1) and b1.shape == (1, H) and b2.shape == (1, 1)

    if use_bf16_matmul is None:
        use_bf16_matmul = _default_bf16()
    mm_dtype = jnp.bfloat16 if use_bf16_matmul else jnp.float32
    out_dtype = x.dtype
    f32 = jnp.float32

    # Lane-dense feature dims: pad ONLY when misaligned (aligned shapes -> zero
    # wrapper-side HBM copies besides an optional dtype cast of the MXU operands).
    D_pad = _round_up(D, 128)
    H_pad = _round_up(H, 128)

    # MXU operands, cast in the wrapper (no per-tile VPU casts of x / W1 / W1g).
    x_in = _pad2(x, N, D_pad, mm_dtype)
    w1_in = _pad2(w1, D_pad, H_pad, mm_dtype)
    # Pre-folded, pre-transposed gradient weight: W1g[h, d] = sign * w2[h] * W1[d, h].
    w1g = (sign * (w1.astype(f32) * w2.astype(f32).reshape(1, H))).T        # (H, D)
    w1g_in = _pad2(w1g, H_pad, D_pad, mm_dtype)
    # VPU / scalar operands stay f32 (added/used after f32 accumulation).
    b1_in = _pad2(b1, 1, H_pad, f32)
    w2r_in = _pad2(w2.reshape(1, H), 1, H_pad, f32)
    b2_in = b2.astype(f32).reshape(1, 1)

    # ---- row-tile selection against an explicit VMEM budget --------------------
    xb = 2 if use_bf16_matmul else 4
    tile_n = max(8, min(int(tile_n), 1024))
    n_ceil = _round_up(N, 8)
    if n_ceil <= tile_n:
        tile_n = n_ceil                         # one tile covers all rows
    else:
        tile_n = _round_up(tile_n, 128)         # large, 128-aligned row tiles
    # Per-step bytes: double-buffered x & grad blocks, y block, tanh temporaries,
    # plus resident weights (counted double-buffered to stay conservative).
    fixed = 2 * 2 * D_pad * H_pad * xb + 2 * 2 * H_pad * 4 + 4096
    per_row = 2 * D_pad * xb + 2 * D_pad * 4 + 2 * 4 + 3 * H_pad * 4
    max_rows = max(8, (int(vmem_budget_bytes) - fixed) // per_row)
    if tile_n > max_rows:
        align = 128 if max_rows >= 128 else 8
        tile_n = max(align, (max_rows // align) * align)

    grid = (pl.cdiv(N, tile_n),)

    def kernel(x_ref, w1_ref, b1_ref, w1g_ref, w2r_ref, b2_ref, y_ref, g_ref):
        # Forward: h = x @ W1 + b1 ; a = tanh(h).  f32 accumulation + f32 elementwise.
        h = jnp.dot(x_ref[...], w1_ref[...],
                    preferred_element_type=jnp.float32) + b1_ref[...]
        a = jnp.tanh(h)                                            # (TN, Hp)  EUP
        # y_n = sum_h a * w2 + b2  (VPU mult + XLU lane reduce; avoids a (Hp,1)
        # matmul and any transposed MXU feed).
        y_ref[...] = (jnp.sum(a * w2r_ref[...], axis=-1, keepdims=True)
                      + b2_ref[0, 0]).astype(y_ref.dtype)
        # grad = (1 - a^2) @ W1g   (sign and w2 pre-folded into W1g in the wrapper).
        g_ref[...] = jnp.dot((1.0 - a * a).astype(mm_dtype), w1g_ref[...],
                             preferred_element_type=jnp.float32).astype(g_ref.dtype)

    cost = pl.CostEstimate(
        flops=4 * N * D_pad * H_pad + 2 * N * H_pad,
        transcendentals=N * H_pad,
        bytes_accessed=(N * D_pad * xb                  # x
                        + N * D_pad * 4 + N * 4         # grad + y outputs
                        + 2 * D_pad * H_pad * xb        # W1 + W1g
                        + 2 * H_pad * 4 + 4),           # b1 + w2 row + b2
    )

    out_shape = (
        jax.ShapeDtypeStruct((N, 1), out_dtype),        # y
        jax.ShapeDtypeStruct((N, D_pad), out_dtype),    # gradients (padded iff D misaligned)
    )

    def build(single_buffer_weights: bool):
        def wspec(shape):
            if single_buffer_weights:
                # Loop-invariant weights: index map is constant across the grid,
                # so a single VMEM buffer suffices (saves resident-weight VMEM).
                return pl.BlockSpec(shape, lambda i: (0, 0),
                                    pipeline_mode=pl.Buffered(1))
            return pl.BlockSpec(shape, lambda i: (0, 0))

        return pl.pallas_call(
            kernel,
            out_shape=out_shape,
            grid_spec=pltpu.PrefetchScalarGridSpec(
                num_scalar_prefetch=0,
                grid=grid,
                in_specs=[
                    pl.BlockSpec((tile_n, D_pad), lambda i: (i, 0)),    # x tile
                    wspec((D_pad, H_pad)),                              # W1 (resident)
                    wspec((1, H_pad)),                                  # b1 (resident)
                    wspec((H_pad, D_pad)),                              # W1g (resident)
                    wspec((1, H_pad)),                                  # w2 as a row
                    pl.BlockSpec(memory_space=pltpu.MemorySpace.SMEM),  # b2 scalar
                ],
                out_specs=[
                    pl.BlockSpec((tile_n, 1), lambda i: (i, 0)),        # y tile
                    pl.BlockSpec((tile_n, D_pad), lambda i: (i, 0)),    # grad tile
                ],
            ),
            compiler_params=pltpu.CompilerParams(
                dimension_semantics=("parallel",),        # shards over v7x's 2 TCs
                vmem_limit_bytes=32 * 1024 * 1024),       # > v5e's 16 MiB scoped default
            cost_estimate=cost,
        )

    args = (x_in, w1_in, b1_in, w1g_in, w2r_in, b2_in)
    try:
        y_out, g_out = build(True)(*args)
        jax.block_until_ready((y_out, g_out))
    except Exception:
        # Installed JAX rejects BlockSpec(pipeline_mode=pl.Buffered(1)) ->
        # fall back to default double-buffered resident weights.
        y_out, g_out = build(False)(*args)

    grad = g_out if D_pad == D else g_out[:, :D]
    return {"y": y_out, "gradients": grad}


if __name__ == "__main__":
    def make_inputs(N, D, H):
        kx, k1, kb1, k2, kb2 = jax.random.split(jax.random.PRNGKey(0), 5)
        x = jax.random.normal(kx, (N, D), dtype=jnp.float32)
        w1 = jax.random.normal(k1, (D, H), dtype=jnp.float32) * 0.1
        b1 = jax.random.normal(kb1, (1, H), dtype=jnp.float32) * 0.1
        w2 = jax.random.normal(k2, (H, 1), dtype=jnp.float32) * 0.1
        b2 = jax.random.normal(kb2, (1, 1), dtype=jnp.float32) * 0.1
        return x, w1, b1, w2, b2

    def reference(x, w1, b1, w2, b2, sign):
        # Same semantics as torch.autograd.grad(y.sum(), x) * sign in the module.
        def energy(xx):
            return jnp.sum(jnp.tanh(xx @ w1 + b1) @ w2 + b2)
        y = jnp.tanh(x @ w1 + b1) @ w2 + b2
        g = sign * jax.grad(energy)(x)
        return y, g

    # Test A: f32 path, ragged N (partial last tile), misaligned D/H (padded path),
    # force convention sign = -1.
    x, w1, b1, w2, b2 = make_inputs(200, 32, 48)
    out = gradient_output(x, w1, b1, w2, b2, sign=-1.0, tile_n=128,
                          use_bf16_matmul=False)
    jax.block_until_ready(out)
    y_ref, g_ref = reference(x, w1, b1, w2, b2, -1.0)
    assert out["y"].shape == (200, 1) and out["gradients"].shape == (200, 32)
    assert jnp.allclose(out["y"], y_ref, atol=1e-3, rtol=1e-3)
    assert jnp.allclose(out["gradients"], g_ref, atol=1e-3, rtol=1e-3)

    # Test B: aligned D/H (no wrapper pad/un-pad copies), bf16 MXU operands,
    # module-default sign = +1.  Looser tolerance because of bf16 operands.
    x, w1, b1, w2, b2 = make_inputs(256, 128, 128)
    out = gradient_output(x, w1, b1, w2, b2, sign=1.0, use_bf16_matmul=True)
    jax.block_until_ready(out)
    y_ref, g_ref = reference(x, w1, b1, w2, b2, 1.0)
    assert out["y"].shape == (256, 1) and out["gradients"].shape == (256, 128)
    assert jnp.allclose(out["y"], y_ref, atol=5e-2, rtol=5e-2)
    assert jnp.allclose(out["gradients"], g_ref, atol=5e-2, rtol=5e-2)

    print("KERNEL_OK")
</pallas_src>

<mosaic_0001>
module attributes {stable_mosaic.version = 11 : i64} {
  func.func @kernel(%arg0: i32, %arg1: memref<128x128xf32, #tpu.memory_space<vmem>>, %arg2: memref<128x128xf32, #tpu.memory_space<vmem>>, %arg3: memref<1x128xf32, #tpu.memory_space<vmem>>, %arg4: memref<128x128xf32, #tpu.memory_space<vmem>>, %arg5: memref<1x128xf32, #tpu.memory_space<vmem>>, %arg6: memref<1x1xf32, #tpu.memory_space<smem>>, %arg7: memref<128x1xf32, #tpu.memory_space<vmem>>, %arg8: memref<128x128xf32, #tpu.memory_space<vmem>>) attributes {dimension_semantics = [#tpu.dimension_semantics<parallel>], iteration_bounds = array<i64: 2>, scalar_prefetch = 0 : i64, scratch_operands = 0 : i64, tpu.core_type = #tpu.core_type<tc>, window_params = [{transform_indices = @transform_0, window_bounds = array<i64: 128, 128>}, {pipeline_mode = #tpu.pipeline_mode<synchronous>, transform_indices = @transform_1, window_bounds = array<i64: 128, 128>}, {pipeline_mode = #tpu.pipeline_mode<synchronous>, transform_indices = @transform_2, window_bounds = array<i64: 1, 128>}, {pipeline_mode = #tpu.pipeline_mode<synchronous>, transform_indices = @transform_3, window_bounds = array<i64: 128, 128>}, {pipeline_mode = #tpu.pipeline_mode<synchronous>, transform_indices = @transform_4, window_bounds = array<i64: 1, 128>}, {transform_indices = @transform_5, window_bounds = array<i64: 1, 1>}, {transform_indices = @transform_6, window_bounds = array<i64: 128, 1>}, {transform_indices = @transform_7, window_bounds = array<i64: 128, 128>}]} {
    %c0 = arith.constant 0 : index
    %c0_0 = arith.constant 0 : index
    %0 = vector.load %arg1[%c0, %c0_0] : memref<128x128xf32, #tpu.memory_space<vmem>>, vector<128x128xf32>
    %c0_1 = arith.constant 0 : index
    %c0_2 = arith.constant 0 : index
    %1 = vector.load %arg2[%c0_1, %c0_2] : memref<128x128xf32, #tpu.memory_space<vmem>>, vector<128x128xf32>
    %cst = arith.constant dense<0.000000e+00> : vector<128x128xf32>
    %2 = tpu.matmul %0, %1, %cst {dimension_numbers = #tpu.dot_dimension_numbers<[1], [0], [0], [1], [0, 0, 1, 1], [], []>} : vector<128x128xf32>, vector<128x128xf32>, vector<128x128xf32> -> vector<128x128xf32>
    %c0_3 = arith.constant 0 : index
    %c0_4 = arith.constant 0 : index
    %3 = vector.load %arg3[%c0_3, %c0_4] : memref<1x128xf32, #tpu.memory_space<vmem>>, vector<1x128xf32>
    %4 = vector.broadcast %3 : vector<1x128xf32> to vector<128x128xf32>
    %5 = arith.addf %2, %4 : vector<128x128xf32>
    %6 = math.tanh %5 : vector<128x128xf32>
    %c0_5 = arith.constant 0 : index
    %c0_6 = arith.constant 0 : index
    %7 = vector.load %arg5[%c0_5, %c0_6] : memref<1x128xf32, #tpu.memory_space<vmem>>, vector<1x128xf32>
    %8 = vector.broadcast %7 : vector<1x128xf32> to vector<128x128xf32>
    %9 = arith.mulf %6, %8 : vector<128x128xf32>
    %cst_7 = arith.constant dense<0.000000e+00> : vector<128xf32>
    %10 = vector.multi_reduction <add>, %9, %cst_7 [1] : vector<128x128xf32> to vector<128xf32>
    %11 = vector.shape_cast %10 : vector<128xf32> to vector<128x1xf32>
    %c0_8 = arith.constant 0 : index
    %c0_9 = arith.constant 0 : index
    %12 = memref.load %arg6[%c0_8, %c0_9] : memref<1x1xf32, #tpu.memory_space<smem>>
    %13 = vector.broadcast %12 : f32 to vector<128x1xf32>
    %14 = arith.addf %11, %13 : vector<128x1xf32>
    %c0_10 = arith.constant 0 : index
    %c0_11 = arith.constant 0 : index
    %15 = vector.load %arg7[%c0_10, %c0_11] : memref<128x1xf32, #tpu.memory_space<vmem>>, vector<128x1xf32>
    tpu.vector_store %arg7[%c0_10, %c0_11], %14 {strides = array<i32>} : memref<128x1xf32, #tpu.memory_space<vmem>>, vector<128x1xf32>,
    %16 = arith.mulf %6, %6 : vector<128x128xf32>
    %cst_12 = arith.constant 1.000000e+00 : f32
    %17 = vector.broadcast %cst_12 : f32 to vector<128x128xf32>
    %18 = arith.subf %17, %16 : vector<128x128xf32>
    %c0_13 = arith.constant 0 : index
    %c0_14 = arith.constant 0 : index
    %19 = vector.load %arg4[%c0_13, %c0_14] : memref<128x128xf32, #tpu.memory_space<vmem>>, vector<128x128xf32>
    %cst_15 = arith.constant dense<0.000000e+00> : vector<128x128xf32>
    %20 = tpu.matmul %18, %19, %cst_15 {dimension_numbers = #tpu.dot_dimension_numbers<[1], [0], [0], [1], [0, 0, 1, 1], [], []>} : vector<128x128xf32>, vector<128x128xf32>, vector<128x128xf32> -> vector<128x128xf32>
    %c0_16 = arith.constant 0 : index
    %c0_17 = arith.constant 0 : index
    %21 = vector.load %arg8[%c0_16, %c0_17] : memref<128x128xf32, #tpu.memory_space<vmem>>, vector<128x128xf32>
    tpu.vector_store %arg8[%c0_16, %c0_17], %20 {strides = array<i32>} : memref<128x128xf32, #tpu.memory_space<vmem>>, vector<128x128xf32>,
    return
  }
  func.func @transform_0(%arg0: i32) -> (i32, i32) {
    %c0_i32 = arith.constant 0 : i32
    %c0_i32_0 = arith.constant 0 : i32
    return %arg0, %c0_i32 : i32, i32
  }
  func.func @transform_1(%arg0: i32) -> (i32, i32) {
    %c0_i32 = arith.constant 0 : i32
    %c0_i32_0 = arith.constant 0 : i32
    %c0_i32_1 = arith.constant 0 : i32
    return %c0_i32, %c0_i32_0 : i32, i32
  }
  func.func @transform_2(%arg0: i32) -> (i32, i32) {
    %c0_i32 = arith.constant 0 : i32
    %c0_i32_0 = arith.constant 0 : i32
    %c0_i32_1 = arith.constant 0 : i32
    return %c0_i32, %c0_i32_0 : i32, i32
  }
  func.func @transform_3(%arg0: i32) -> (i32, i32) {
    %c0_i32 = arith.constant 0 : i32
    %c0_i32_0 = arith.constant 0 : i32
    %c0_i32_1 = arith.constant 0 : i32
    return %c0_i32, %c0_i32_0 : i32, i32
  }
  func.func @transform_4(%arg0: i32) -> (i32, i32) {
    %c0_i32 = arith.constant 0 : i32
    %c0_i32_0 = arith.constant 0 : i32
    %c0_i32_1 = arith.constant 0 : i32
    return %c0_i32, %c0_i32_0 : i32, i32
  }
  func.func @transform_5(%arg0: i32) -> (i32, i32) {
    %c0_i32 = arith.constant 0 : i32
    %c0_i32_0 = arith.constant 0 : i32
    %c0_i32_1 = arith.constant 0 : i32
    return %c0_i32, %c0_i32_0 : i32, i32
  }
  func.func @transform_6(%arg0: i32) -> (i32, i32) {
    %c0_i32 = arith.constant 0 : i32
    %c0_i32_0 = arith.constant 0 : i32
    return %arg0, %c0_i32 : i32, i32
  }
  func.func @transform_7(%arg0: i32) -> (i32, i32) {
    %c0_i32 = arith.constant 0 : i32
    %c0_i32_0 = arith.constant 0 : i32
    return %arg0, %c0_i32 : i32, i32
  }
}

module attributes {stable_mosaic.version = 11 : i64} {
  func.func @kernel(%arg0: i32, %arg1: memref<128x128xf32, #tpu.memory_space<vmem>>, %arg2: memref<128x128xf32, #tpu.memory_space<vmem>>, %arg3: memref<1x128xf32, #tpu.memory_space<vmem>>, %arg4: memref<128x128xf32, #tpu.memory_space<vmem>>, %arg5: memref<1x128xf32, #tpu.memory_space<vmem>>, %arg6: memref<1x1xf32, #tpu.memory_space<smem>>, %arg7: memref<128x1xf32, #tpu.memory_space<vmem>>, %arg8: memref<128x128xf32, #tpu.memory_space<vmem>>) attributes {dimension_semantics = [#tpu.dimension_semantics<parallel>], iteration_bounds = array<i64: 2>, scalar_prefetch = 0 : i64, scratch_operands = 0 : i64, tpu.core_type = #tpu.core_type<tc>, window_params = [{transform_indices = @transform_0, window_bounds = array<i64: 128, 128>}, {pipeline_mode = #tpu.pipeline_mode<synchronous>, transform_indices = @transform_1, window_bounds = array<i64: 128, 128>}, {pipeline_mode = #tpu.pipeline_mode<synchronous>, transform_indices = @transform_2, window_bounds = array<i64: 1, 128>}, {pipeline_mode = #tpu.pipeline_mode<synchronous>, transform_indices = @transform_3, window_bounds = array<i64: 128, 128>}, {pipeline_mode = #tpu.pipeline_mode<synchronous>, transform_indices = @transform_4, window_bounds = array<i64: 1, 128>}, {transform_indices = @transform_5, window_bounds = array<i64: 1, 1>}, {transform_indices = @transform_6, window_bounds = array<i64: 128, 1>}, {transform_indices = @transform_7, window_bounds = array<i64: 128, 128>}]} {
    %c0 = arith.constant 0 : index
    %c0_0 = arith.constant 0 : index
    %0 = vector.load %arg1[%c0, %c0_0] : memref<128x128xf32, #tpu.memory_space<vmem>>, vector<128x128xf32>
    %c0_1 = arith.constant 0 : index
    %c0_2 = arith.constant 0 : index
    %1 = vector.load %arg2[%c0_1, %c0_2] : memref<128x128xf32, #tpu.memory_space<vmem>>, vector<128x128xf32>
    %cst = arith.constant dense<0.000000e+00> : vector<128x128xf32>
    %2 = tpu.matmul %0, %1, %cst {dimension_numbers = #tpu.dot_dimension_numbers<[1], [0], [0], [1], [0, 0, 1, 1], [], []>} : vector<128x128xf32>, vector<128x128xf32>, vector<128x128xf32> -> vector<128x128xf32>
    %c0_3 = arith.constant 0 : index
    %c0_4 = arith.constant 0 : index
    %3 = vector.load %arg3[%c0_3, %c0_4] : memref<1x128xf32, #tpu.memory_space<vmem>>, vector<1x128xf32>
    %4 = vector.broadcast %3 : vector<1x128xf32> to vector<128x128xf32>
    %5 = arith.addf %2, %4 : vector<128x128xf32>
    %6 = math.tanh %5 : vector<128x128xf32>
    %c0_5 = arith.constant 0 : index
    %c0_6 = arith.constant 0 : index
    %7 = vector.load %arg5[%c0_5, %c0_6] : memref<1x128xf32, #tpu.memory_space<vmem>>, vector<1x128xf32>
    %8 = vector.broadcast %7 : vector<1x128xf32> to vector<128x128xf32>
    %9 = arith.mulf %6, %8 : vector<128x128xf32>
    %cst_7 = arith.constant dense<0.000000e+00> : vector<128xf32>
    %10 = vector.multi_reduction <add>, %9, %cst_7 [1] : vector<128x128xf32> to vector<128xf32>
    %11 = vector.shape_cast %10 : vector<128xf32> to vector<128x1xf32>
    %c0_8 = arith.constant 0 : index
    %c0_9 = arith.constant 0 : index
    %12 = memref.load %arg6[%c0_8, %c0_9] : memref<1x1xf32, #tpu.memory_space<smem>>
    %13 = vector.broadcast %12 : f32 to vector<128x1xf32>
    %14 = arith.addf %11, %13 : vector<128x1xf32>
    %c0_10 = arith.constant 0 : index
    %c0_11 = arith.constant 0 : index
    %15 = vector.load %arg7[%c0_10, %c0_11] : memref<128x1xf32, #tpu.memory_space<vmem>>, vector<128x1xf32>
    tpu.vector_store %arg7[%c0_10, %c0_11], %14 {strides = array<i32>} : memref<128x1xf32, #tpu.memory_space<vmem>>, vector<128x1xf32>,
    %16 = arith.mulf %6, %6 : vector<128x128xf32>
    %cst_12 = arith.constant 1.000000e+00 : f32
    %17 = vector.broadcast %cst_12 : f32 to vector<128x128xf32>
    %18 = arith.subf %17, %16 : vector<128x128xf32>
    %c0_13 = arith.constant 0 : index
    %c0_14 = arith.constant 0 : index
    %19 = vector.load %arg4[%c0_13, %c0_14] : memref<128x128xf32, #tpu.memory_space<vmem>>, vector<128x128xf32>
    %cst_15 = arith.constant dense<0.000000e+00> : vector<128x128xf32>
    %20 = tpu.matmul %18, %19, %cst_15 {dimension_numbers = #tpu.dot_dimension_numbers<[1], [0], [0], [1], [0, 0, 1, 1], [], []>} : vector<128x128xf32>, vector<128x128xf32>, vector<128x128xf32> -> vector<128x128xf32>
    %c0_16 = arith.constant 0 : index
    %c0_17 = arith.constant 0 : index
    %21 = vector.load %arg8[%c0_16, %c0_17] : memref<128x128xf32, #tpu.memory_space<vmem>>, vector<128x128xf32>
    tpu.vector_store %arg8[%c0_16, %c0_17], %20 {strides = array<i32>} : memref<128x128xf32, #tpu.memory_space<vmem>>, vector<128x128xf32>,
    return
  }
  func.func @transform_0(%arg0: i32) -> (i32, i32) {
    %c0_i32 = arith.constant 0 : i32
    %c0_i32_0 = arith.constant 0 : i32
    return %arg0, %c0_i32 : i32, i32
  }
  func.func @transform_1(%arg0: i32) -> (i32, i32) {
    %c0_i32 = arith.constant 0 : i32
    %c0_i32_0 = arith.constant 0 : i32
    %c0_i32_1 = arith.constant 0 : i32
    return %c0_i32, %c0_i32_0 : i32, i32
  }
  func.func @transform_2(%arg0: i32) -> (i32, i32) {
    %c0_i32 = arith.constant 0 : i32
    %c0_i32_0 = arith.constant 0 : i32
    %c0_i32_1 = arith.constant 0 : i32
    return %c0_i32, %c0_i32_0 : i32, i32
  }
  func.func @transform_3(%arg0: i32) -> (i32, i32) {
    %c0_i32 = arith.constant 0 : i32
    %c0_i32_0 = arith.constant 0 : i32
    %c0_i32_1 = arith.constant 0 : i32
    return %c0_i32, %c0_i32_0 : i32, i32
  }
  func.func @transform_4(%arg0: i32) -> (i32, i32) {
    %c0_i32 = arith.constant 0 : i32
    %c0_i32_0 = arith.constant 0 : i32
    %c0_i32_1 = arith.constant 0 : i32
    return %c0_i32, %c0_i32_0 : i32, i32
  }
  func.func @transform_5(%arg0: i32) -> (i32, i32) {
    %c0_i32 = arith.constant 0 : i32
    %c0_i32_0 = arith.constant 0 : i32
    %c0_i32_1 = arith.constant 0 : i32
    return %c0_i32, %c0_i32_0 : i32, i32
  }
  func.func @transform_6(%arg0: i32) -> (i32, i32) {
    %c0_i32 = arith.constant 0 : i32
    %c0_i32_0 = arith.constant 0 : i32
    return %arg0, %c0_i32 : i32, i32
  }
  func.func @transform_7(%arg0: i32) -> (i32, i32) {
    %c0_i32 = arith.constant 0 : i32
    %c0_i32_0 = arith.constant 0 : i32
    return %arg0, %c0_i32 : i32, i32
  }
}

</mosaic_0001>

<bundles_post_ra>
// kernel: tpu_custom_call.1
= control target key start
LH: loop header
LB: loop body
LE: loop exit
PB: predicated region body
PF: predicated region fallthrough
CT: control target
= control target key end

     0   :  { %s2036_s0 = inlined_call_operand.hbm [shape: f32[200,128], index: 0, kind: input, shape index: {}]   ;;  %s2037_s1 = inlined_call_operand.hbm [shape: f32[128,128], index: 1, kind: input, shape index: {}]   ;;  %s2038_s2 = inlined_call_operand.vmem [shape: f32[1,128], index: 2, kind: input, shape index: {}]   ;;  %s2039_s3 = inlined_call_operand.hbm [shape: f32[128,128], index: 3, kind: input, shape index: {}]   ;;  %s2040_s4 = inlined_call_operand.vmem [shape: f32[1,128], index: 4, kind: input, shape index: {}]   ;;  %s2041_s5 = inlined_call_operand.<no memory space> [shape: f32[1,1], index: 5, kind: input, shape index: {}]   ;;  %s2042_s6 = inlined_call_operand.vmem [shape: f32[200,1], index: 6, kind: output, shape index: {0}]   ;;  %s2043_s7 = inlined_call_operand.hbm [shape: f32[200,128], index: 7, kind: output, shape index: {1}]  }
   0x1   :  { %2047 = sst [smem:[#allocation14_spill]] %s2036_s0 }
   0x2   :  { %2048 = sst [smem:[#allocation15_spill]] %s2037_s1 }
   0x3   :  { %2049 = sst [smem:[#allocation16_spill]] %s2039_s3 }
   0x4   :  { %13 = sst [smem:[#allocation2]] %s2041_s5 }
   0x5   :  { %14 = vsyncpa [#allocation4], 0 }
   0x6   :  { %16 = vsyncpa [#allocation4 + $0x1], 0 }
   0x7   :  { %17 = vsyncpa [#allocation7], 0 }
   0x8   :  { %18 = vsyncpa [#allocation5], 0 }
   0x9   :  { %20 = vsyncpa [#allocation5 + $0x1], 0  ;;  %s1605_s26 = smov 0   ;;  %s1607_s27 = smov 0  }
   0xa   :  { %s1609_s28 = smov 0   ;;  %s1611_s29 = smov 0  }
   0xb LB: > { %s1626_s5 = sadd.s32 4294967295, %s1518_s29   ;;  %s1063_s30 = sadd.s32 4294967294, %s1518_s29   ;;  %s1518_s29 = sphi %s1611_s29, %s2075_s29   ;;  %s1514_s28 = sphi %s1609_s28, %s2074_s28   ;;  %s1510_s27 = sphi %s1607_s27, %s2073_s27   ;;  %s1506_s26 = sphi %s1605_s26, %s2072_s26  }
   0xc   : > { %s1630_s8 = sadd.s32 1, %s1518_s29   ;;  %s33_s9 = sadd.s32 1, %s1514_s28 }
   0xd   : > { %s30_s10 = ssub.s32 %s1518_s29, %s1630_s8  ;;  %p40_p0 = scmp.ne.s32.totalorder %s1514_s28, %s1510_s27 }
   0xe   : > { %p31_p1 = scmp.eq.s32.totalorder %s30_s10, 0  ;;  %p41_p2 = scmp.eq.s32.totalorder %s1518_s29, 0 }
   0xf   : > { %p46_p3 = scmp.ne.s32.totalorder %s1510_s27, %s1506_s26  ;;  %p2046_p4 = scmp.eq.s32.totalorder %s1626_s5, 0 }
  0x10   : > { %s1642_s11 = scalar_select %p31_p1, %s1514_s28, %s33_s9  }
  0x11   : > { %p1644_p5 = por %p41_p2, %p40_p0  ;;  %p1650_p6 = por %p2046_p4, %p46_p3 }
  0x12   : > { %p175_p7 = scmp.eq.s32.totalorder %s1626_s5, 1  ;;  %p207_p8 = scmp.eq.s32.totalorder %s1063_s30, 1 }
  0x13   : > { %p1064_p9 = scmp.ge.s32.totalorder %s1518_s29, 1  ;;  %p214_p10 = scmp.lt.s32.totalorder %s1518_s29, 3 }
  0x14   : > { %p1657_p11 = por %p175_p7, %p40_p0  ;;  %p1661_p12 = por %p207_p8, %p46_p3 }
  0x15   : > { %p1665_p13 = pnand %p1064_p9, %p214_p10  ;;  %s2055_s1 = sld [smem:[#allocation15_spill]] }
  0x16   : > { %s2053_s15 = scalar_select %p1661_p12, 1, 0 }
  0x17   : > { %p1152_p1 = pneg %p1665_p13  ;;  %s1552_s20 = smov [#allocation6]  }
  0x18   : > { %s227_s21 = sshll.u32 %s1552_s20, 4  ;;  %s2056_s3 = sld [smem:[#allocation16_spill]]  ;;  %s228_s21 = int_to_ptr.vmem [resolvable:$true] %s227_s21 }
  0x19   : > { %p1153_p0 = pnand %p1152_p1, %p2046_p4  ;;  %s1553_s25 = smov 128  }
  0x1a   : > { %s1554_s30 = smov 8   ;;  %s1555_s9 = smov [#allocation8]  }
  0x1b   : > { %s225_s19 = sshll.u32 %s2055_s1, 4  ;;  %s244_s10 = sshll.u32 %s1555_s9, 4  ;;  %s226_s19 = int_to_ptr.hbm [resolvable:$true] %s225_s19  ;;  %s245_s10 = int_to_ptr.vmem [resolvable:$true] %s244_s10 }
  0x1c   : > { %1155 = dma.hbm_to_vmem [thread:$0]  (!%p1153_p0), %s226_s19, 2048, %s228_s21, [#allocation7], %s1553_s25, %s1553_s25, %s1554_s30  }
  0x1d   : > { %p2045_p2 = scmp.ge.s32.totalorder %s1518_s29, 2 }
  0x1e   : > { %s242_s24 = sshll.u32 %s2056_s3, 4  ;;  %s243_s24 = int_to_ptr.hbm [resolvable:$true] %s242_s24 }
  0x1f   : > { %1158 = dma.hbm_to_vmem [thread:$0]  (!%p1153_p0), %s243_s24, 2048, %s245_s10, [#allocation7], %s1553_s25, %s1553_s25, %s1554_s30  }
  0x20   : > { %260 = sbr.rel (%p2045_p2) target bundleno = 80 (0x50), region = 36 }
  0x25   : > { %263 = sbr.rel (!%p1644_p5) target bundleno = 80 (0x50), region = 40  ;;  %s264_s17 = sand.u32 (%p1644_p5), 1, %s1514_s28  }
  0x26   : > { %s1069_s18 = sshll.u32 (%p1644_p5), %s1518_s29, 4  ;;  %s1068_s20 = sshll.u32 (%p1644_p5), %s264_s17, 7 }
  0x27   : > { %s270_s22 = ssub.s32 (%p1644_p5), 25, %s1069_s18  ;;  %s1689_s24 = scalar_lea.sflag (%p1644_p5), [#allocation4], %s264_s17 }
  0x28   : > { %p271_p3 = scmp.lt.s32.totalorder (%p1644_p5), %s270_s22, 16  ;;  %s268_s25 = scalar_lea.vmem (%p1644_p5), [#allocation3], %s1068_s20 }
  0x2a   : > { %s2077_s22 = smov (!%p271_p3, %s270_s22), 16 }
  0x2b   : > { %s1070_s19 = sshll.u32 %s2077_s22, 3 }
  0x2c   : > { %s274_s21 = ssub.s32 128, %s1070_s19 }
  0x2d   : > { %s275_s23 = sshll.u32 %s274_s21, 4 }
  0x2e   : > { %276 = vsyncadd %s1689_s24, %s275_s23  ;;  %p1692_p5 = scmp.ne.s32.totalorder %s1070_s19, 0  ;;  %s1105_s30 = sshll.u32 %s1518_s29, 7 }
  0x2f   : > { %s2058_s0 = sld [smem:[#allocation14_spill]]  ;;  %s1700_s1 = sshll.u32 %s268_s25, 4  ;;  %s284_s1 = int_to_ptr.vmem [resolvable:$true] %s1700_s1 }
  0x30   : > { %s2044_s20 = sshll.u32 %s2077_s22, 7 }
  0x31   : > { %s1368_s19 = sshrl.u32 %s2044_s20, 4 }
  0x35   : > { %s279_s18 = scalar_lea.hbm %s2058_s0, %s1105_s30  ;;  %s1377_s25 = scalar_lea.hbm %s2058_s0, 200 }
  0x36   : > { %s281_s17 = sshll.u32 %s279_s18, 4  ;;  %s1703_s17 = int_to_ptr.hbm [resolvable:$true] %s281_s17 }
  0x37   : > { %s1366_s21 = sshra.s32 %s1703_s17, 4  ;;  %s1367_s21 = int_to_ptr.hbm [resolvable:$true] %s1366_s21 }
  0x38   : > { %s1373_s23 = scalar_lea.hbm %s1367_s21, %s1368_s19  ;;  %p1378_p10 = scmp.lt.s32.totalorder %s1367_s21, %s2058_s0 }
  0x39   : > { %p1374_p7 = scmp.ne.s32.totalorder %s1367_s21, %s1373_s23  ;;  %p1379_p1 = scmp.lt.s32.totalorder %s1377_s25, %s1373_s23 }
  0x3b   : > { %p1375_p8 = pnand %p1374_p7, %p1692_p5  ;;  %p1380_p0 = por %p1379_p1, %p1378_p10 }
  0x3d   : > { %p1376_p9 = pneg %p1375_p8 }
  0x3f   : > { %p1381_p3 = pnand %p1380_p0, %p1376_p9 }
  0x41   : > { %1384 = shalt.err (!%p1381_p3)
}
  0x42   : > { %s1385_s20 = sshra.s32 %s284_s1, 4  ;;  %s1556_s9 = smov [#allocation3]   ;;  %s1386_s20 = int_to_ptr.vmem [resolvable:$true] %s1385_s20 }
  0x43   : > { %s1392_s3 = scalar_lea.vmem %s1386_s20, %s1368_s19  ;;  %s1396_s30 = scalar_lea.vmem %s1556_s9, 256 }
  0x44   : > { %p1393_p7 = scmp.ne.s32.totalorder %s1386_s20, %s1392_s3  ;;  %p1398_p4 = scmp.lt.s32.totalorder %s1396_s30, %s1392_s3 }
  0x46   : > { %p1394_p8 = pnand %p1393_p7, %p1692_p5 }
  0x48   : > { %p1395_p2 = pneg %p1394_p8 }
  0x4a   : > { %p1400_p12 = pnand %p1398_p4, %p1395_p2 }
  0x4c   : > { %1403 = shalt.err (!%p1400_p12)
}
  0x4d   : > { %s1557_s21 = smov 128   ;;  %s1558_s23 = smov 8  }
  0x4e   : > { %s2059_s25 = sshll.u32 %s2077_s22, 7 }
  0x4f   : > { %289 = dma.hbm_to_vmem [thread:$0]  (%p1692_p5), %s1703_s17, %s2059_s25, %s284_s1, %s1689_s24, %s1557_s21, %s1557_s21, %s1558_s23  }
  0x50 PF: > { %295 = sbr.rel (%p1665_p13) target bundleno = 540 (0x21c), region = 44  ;;  %s1732_s3 = sand.u32 (!%p1665_p13), 1, %s1510_s27  }
  0x51   : > { %s1735_s20 = sshll.u32 (!%p1665_p13), %s1732_s3, 7  ;;  %s298_s19 = scalar_lea.sflag (!%p1665_p13), [#allocation4], %s1732_s3 }
  0x52   : > { %s1739_s10 = scalar_lea.vmem (!%p1665_p13), [#allocation3], %s1735_s20 }
  0x55   : > { %1493 = dma.done.wait (%p1650_p6), %s298_s19, 2048  }
  0x56   : > { %1495 = vsyncadd (%p1650_p6), %s298_s19, 4294965248  ;;  %p2060_p4 = scmp.eq.s32.totalorder %s1626_s5, 0 }
  0x58   : > { %1497 = dma.done.wait (%p2060_p4), [#allocation7], 4096   ;;  %p2061_p12 = pmov %p2060_p4 }
  0x59   : > { %v393_v0 = vld [vmem:[#allocation6 + $0x78] sm:$0xff]  ;;  %v392_v1 = vld [vmem:[#allocation6 + $0x70] sm:$0xff]  ;;  %v391_v2 = vld [vmem:[#allocation6 + $0x68] sm:$0xff]  ;;  %s531_s24 = sld [smem:[#allocation2]]  ;;  %vm549_vm0 = vcmask 7168   ;;  %s1811_s12 = scalar_lea.vmem [#allocation9], %s1735_s20  }
  0x5a   : > { %1499 = vsyncadd (%p2061_p12), [#allocation7], 4294963200  ;;  %398 = vmatpush.msra.mxu0 %v393_v0  ;;  %1110 = vmatpush.msra.mxu2 %v393_v0  ;;  %v390_v3 = vld [vmem:[#allocation6 + $0x60] sm:$0xff]  ;;  %v389_v4 = vld [vmem:[#allocation6 + $0x58] sm:$0xff]  ;;  %s1822_s17 = scalar_lea.vmem [#allocation10], %s1735_s20  ;;  %s1083_s9 = sshll.u32 (%p1657_p11), %s1626_s5, 4 }
  0x5b   : > { %v388_v5 = vld [vmem:[#allocation6 + $0x50] sm:$0xff]  ;;  %v387_v6 = vld [vmem:[#allocation6 + $0x48] sm:$0xff]  ;;  %v386_v7 = vld [vmem:[#allocation6 + $0x40] sm:$0xff]  ;;  %s1106_s30 = sshll.u32 (%p1657_p11), %s1626_s5, 7  ;;  %s708_s21 = ssub.s32 (%p1657_p11), 25, %s1083_s9 }
  0x5c   : > { %399 = vmatpush.msra.mxu0 %v392_v1  ;;  %1111 = vmatpush.msra.mxu2 %v392_v1  ;;  %v385_v8 = vld [vmem:[#allocation6 + $0x38] sm:$0xff]  ;;  %v384_v9 = vld [vmem:[#allocation6 + $0x30] sm:$0xff]  ;;  %v383_v10 = vld [vmem:[#allocation6 + $0x28] sm:$0xff]  ;;  %s1887_s20 = scalar_lea.vmem (%p1657_p11), %s2042_s6, %s1106_s30   ;;  %p709_p6 = scmp.lt.s32.totalorder (%p1657_p11), %s708_s21, 16 }
  0x5d   : > { %v382_v11 = vld [vmem:[#allocation6 + $0x20] sm:$0xff]  ;;  %v381_v12 = vld [vmem:[#allocation6 + $0x18] sm:$0xff]  ;;  %v380_v13 = vld [vmem:[#allocation6 + $0x10] sm:$0xff] }
  0x5e   : > { %400 = vmatpush.msra.mxu0 %v391_v2  ;;  %1112 = vmatpush.msra.mxu2 %v391_v2  ;;  %v379_v14 = vld [vmem:[#allocation6 + $0x8] sm:$0xff]  ;;  %v378_v15 = vld [vmem:[#allocation6] sm:$0xff]  ;;  %v364_v20 = vld [vmem:[%s1739_s10 + $0x10] sm:$0xff] }
  0x5f   : > { %v362_v16 = vld [vmem:[%s1739_s10] sm:$0xff]  ;;  %v363_v18 = vld [vmem:[%s1739_s10 + $0x8] sm:$0xff]  ;;  %v372_v21 = vld [vmem:[%s1739_s10 + $0x50] sm:$0xff] }
  0x60   : > { %401 = vmatpush.msra.mxu0 %v390_v3  ;;  %1113 = vmatpush.msra.mxu2 %v390_v3  ;;  %v370_v17 = vld [vmem:[%s1739_s10 + $0x40] sm:$0xff]  ;;  %v371_v19 = vld [vmem:[%s1739_s10 + $0x48] sm:$0xff]  ;;  %v365_v22 = vld [vmem:[%s1739_s10 + $0x18] sm:$0xff] }
  0x61   : > { %v373_v23 = vld [vmem:[%s1739_s10 + $0x58] sm:$0xff]  ;;  %v612_v25 = vld [vmem:[#allocation8 + $0x70] sm:$0xff]  ;;  %v611_v26 = vld [vmem:[#allocation8 + $0x68] sm:$0xff] }
  0x62   : > { %402 = vmatpush.msra.mxu0 %v389_v4  ;;  %1114 = vmatpush.msra.mxu2 %v389_v4  ;;  %v613_v24 = vld [vmem:[#allocation8 + $0x78] sm:$0xff]  ;;  %v610_v27 = vld [vmem:[#allocation8 + $0x60] sm:$0xff]  ;;  %v608_v31 = vld [vmem:[#allocation8 + $0x50] sm:$0xff] }
  0x63   : > { %1126 = vmatpush.msra.mxu3 %v613_v24  ;;  %614 = vmatpush.msra.mxu1 %v613_v24  ;;  %v366_v28 = vld [vmem:[%s1739_s10 + $0x20] sm:$0xff]  ;;  %v609_v30 = vld [vmem:[#allocation8 + $0x58] sm:$0xff]  ;;  %v367_v32 = vld [vmem:[%s1739_s10 + $0x28] sm:$0xff] }
  0x64   : > { %403 = vmatpush.msra.mxu0 %v388_v5  ;;  %1115 = vmatpush.msra.mxu2 %v388_v5  ;;  %v374_v29 = vld [vmem:[%s1739_s10 + $0x60] sm:$0xff]  ;;  %v375_v33 = vld [vmem:[%s1739_s10 + $0x68] sm:$0xff]  ;;  %v368_v34 = vld [vmem:[%s1739_s10 + $0x30] sm:$0xff] }
  0x65   : > { %1127 = vmatpush.msra.mxu3 %v612_v25  ;;  %615 = vmatpush.msra.mxu1 %v612_v25  ;;  %v376_v35 = vld [vmem:[%s1739_s10 + $0x70] sm:$0xff]  ;;  %v369_v36 = vld [vmem:[%s1739_s10 + $0x38] sm:$0xff]  ;;  %v607_v38 = vld [vmem:[#allocation8 + $0x48] sm:$0xff] }
  0x66   : > { %404 = vmatpush.msra.mxu0 %v387_v6  ;;  %1116 = vmatpush.msra.mxu2 %v387_v6  ;;  %v377_v37 = vld [vmem:[%s1739_s10 + $0x78] sm:$0xff]  ;;  %v606_v39 = vld [vmem:[#allocation8 + $0x40] sm:$0xff]  ;;  %v604_v41 = vld [vmem:[#allocation8 + $0x30] sm:$0xff] }
  0x67   : > { %1128 = vmatpush.msra.mxu3 %v611_v26  ;;  %616 = vmatpush.msra.mxu1 %v611_v26  ;;  %v605_v40 = vld [vmem:[#allocation8 + $0x38] sm:$0xff]  ;;  %v603_v42 = vld [vmem:[#allocation8 + $0x28] sm:$0xff]  ;;  %v602_v43 = vld [vmem:[#allocation8 + $0x20] sm:$0xff] }
  0x68   : > { %405 = vmatpush.msra.mxu0 %v386_v7  ;;  %1117 = vmatpush.msra.mxu2 %v386_v7  ;;  %v601_v44 = vld [vmem:[#allocation8 + $0x18] sm:$0xff]  ;;  %v600_v45 = vld [vmem:[#allocation8 + $0x10] sm:$0xff]  ;;  %v599_v46 = vld [vmem:[#allocation8 + $0x8] sm:$0xff] }
  0x69   : > { %1129 = vmatpush.msra.mxu3 %v610_v27  ;;  %617 = vmatpush.msra.mxu1 %v610_v27  ;;  %v598_v47 = vld [vmem:[#allocation8] sm:$0xff] }
  0x6a   : > { %406 = vmatpush.msra.mxu0 %v385_v8  ;;  %1118 = vmatpush.msra.mxu2 %v385_v8  ;;  %v1768_v48 = vld [vmem:[%s2038_s2] ss:$0 sm:$0xff] }
  0x6b   : > { %1130 = vmatpush.msra.mxu3 %v609_v30  ;;  %618 = vmatpush.msra.mxu1 %v609_v30  ;;  %v1774_v52 = vld [vmem:[%s2040_s4] ss:$0 sm:$0xff] }
  0x6c   : > { %407 = vmatpush.msra.mxu0 %v384_v9  ;;  %1119 = vmatpush.msra.mxu2 %v384_v9 }
  0x6d   : > { %1131 = vmatpush.msra.mxu3 %v608_v31  ;;  %619 = vmatpush.msra.mxu1 %v608_v31 }
  0x6e   : > { %408 = vmatpush.msra.mxu0 %v383_v10  ;;  %1120 = vmatpush.msra.mxu2 %v383_v10 }
  0x6f   : > { %1132 = vmatpush.msra.mxu3 %v607_v38  ;;  %620 = vmatpush.msra.mxu1 %v607_v38 }
  0x70   : > { %409 = vmatpush.msra.mxu0 %v382_v11  ;;  %1121 = vmatpush.msra.mxu2 %v382_v11 }
  0x71   : > { %1133 = vmatpush.msra.mxu3 %v606_v39  ;;  %621 = vmatpush.msra.mxu1 %v606_v39 }
  0x72   : > { %410 = vmatpush.msra.mxu0 %v381_v12  ;;  %1122 = vmatpush.msra.mxu2 %v381_v12 }
  0x73   : > { %1134 = vmatpush.msra.mxu3 %v605_v40  ;;  %622 = vmatpush.msra.mxu1 %v605_v40 }
  0x74   : > { %411 = vmatpush.msra.mxu0 %v380_v13  ;;  %1123 = vmatpush.msra.mxu2 %v380_v13 }
  0x75   : > { %1135 = vmatpush.msra.mxu3 %v604_v41  ;;  %623 = vmatpush.msra.mxu1 %v604_v41 }
  0x76   : > { %412 = vmatpush.msra.mxu0 %v379_v14  ;;  %1124 = vmatpush.msra.mxu2 %v379_v14 }
  0x77   : > { %1136 = vmatpush.msra.mxu3 %v603_v42  ;;  %624 = vmatpush.msra.mxu1 %v603_v42 }
  0x78   : > { %413 = vmatpush.msra.mxu0 %v378_v15  ;;  %1125 = vmatpush.msra.mxu2 %v378_v15 }
  0x79   : > { %414 = vmatmul.f32.vlgmr.msra.gmra.mxu0 %v362_v16  ;;  %438 = vmatmul.f32.vlgmr.msra.gmra.mxu2 %v370_v17 }
  0x7a   : > { %1137 = vmatpush.msra.mxu3 %v602_v43  ;;  %625 = vmatpush.msra.mxu1 %v602_v43 }
  0x7c   : > { %1138 = vmatpush.msra.mxu3 %v601_v44  ;;  %626 = vmatpush.msra.mxu1 %v601_v44 }
  0x7e   : > { %1139 = vmatpush.msra.mxu3 %v600_v45  ;;  %627 = vmatpush.msra.mxu1 %v600_v45 }
  0x80   : > { %1140 = vmatpush.msra.mxu3 %v599_v46  ;;  %628 = vmatpush.msra.mxu1 %v599_v46 }
  0x81   : > { %417 = vmatmul.f32.gmra.mxu0 %v363_v18  ;;  %441 = vmatmul.f32.gmra.mxu2 %v371_v19 }
  0x82   : > { %1141 = vmatpush.msra.mxu3 %v598_v47  ;;  %629 = vmatpush.msra.mxu1 %v598_v47 }
  0x89   : > { %420 = vmatmul.f32.gmra.mxu0 %v364_v20  ;;  %444 = vmatmul.f32.gmra.mxu2 %v372_v21 }
  0x91   : > { %423 = vmatmul.f32.gmra.mxu0 %v365_v22  ;;  %447 = vmatmul.f32.gmra.mxu2 %v373_v23 }
  0x99   : > { %426 = vmatmul.f32.gmra.mxu0 %v366_v28  ;;  %450 = vmatmul.f32.gmra.mxu2 %v374_v29 }
  0xa1   : > { %429 = vmatmul.f32.gmra.mxu0 %v367_v32  ;;  %453 = vmatmul.f32.gmra.mxu2 %v375_v33 }
  0xa9   : > { %432 = vmatmul.f32.gmra.mxu0 %v368_v34  ;;  %456 = vmatmul.f32.gmra.mxu2 %v376_v35 }
  0xb1   : > { %435 = vmatmul.f32.gmra.mxu0 %v369_v36  ;;  %459 = vmatmul.f32.gmra.mxu2 %v377_v37 }
  0xf6   : > { %v415_v49 = vpop.f32.mrf.mxu0 }
  0xf7   : > { %v416_v50 = vadd.f32 %v1768_v48, %v415_v49 }
  0xf9   : > { %1274 = vtanh.f32 %v416_v50 }
  0xfc   : > { %v439_v51 = vpop.f32.mrf.mxu2 }
  0xfd   : > { %v440_v53 = vadd.f32 %v1768_v48, %v439_v51 }
  0xfe   : > { %v418_v54 = vpop.f32.mrf.mxu0 }
  0xff   : > { %v1275_v55 = vpop.eup %1274  ;;  %1276 = vtanh.f32 %v440_v53  ;;  %v419_v56 = vadd.f32 %v1768_v48, %v418_v54 }
 0x100   : > { %v483_v57 = vmul.f32 %v1275_v55, %v1774_v52  ;;  %v566_v58 = vmul.f32 %v1275_v55, %v1275_v55 }
 0x101   : > { %1278 = vtanh.f32 %v419_v56 }
 0x102   : > { %499 = vadd.xlane.f32.xlu0 %v483_v57  ;;  %v582_v59 = vsub.f32 1.0, %v566_v58 }
 0x104   : > { %v442_v60 = vpop.f32.mrf.mxu2  ;;  %630 = vmatmul.f32.vlgmr.msra.gmra.mxu1 %v582_v59 }
 0x105   : > { %v1277_v61 = vpop.eup %1276  ;;  %v443_v62 = vadd.f32 %v1768_v48, %v442_v60 }
 0x106   : > { %v421_v63 = vpop.f32.mrf.mxu0  ;;  %v491_v0 = vmul.f32 %v1277_v61, %v1774_v52  ;;  %v574_v1 = vmul.f32 %v1277_v61, %v1277_v61 }
 0x107   : > { %v1279_v2 = vpop.eup %1278  ;;  %1280 = vtanh.f32 %v443_v62  ;;  %v422_v3 = vadd.f32 %v1768_v48, %v421_v63 }
 0x108   : > { %515 = vadd.xlane.f32.xlu2 %v491_v0  ;;  %v590_v4 = vsub.f32 1.0, %v574_v1  ;;  %v484_v5 = vmul.f32 %v1279_v2, %v1774_v52  ;;  %v567_v6 = vmul.f32 %v1279_v2, %v1279_v2 }
 0x109   : > { %1282 = vtanh.f32 %v422_v3 }
 0x10a   : > { %654 = vmatmul.f32.vlgmr.msra.gmra.mxu3 %v590_v4  ;;  %501 = vadd.xlane.f32.xlu0 %v484_v5  ;;  %v583_v7 = vsub.f32 1.0, %v567_v6 }
 0x10c   : > { %v445_v8 = vpop.f32.mrf.mxu2  ;;  %633 = vmatmul.f32.gmra.mxu1 %v583_v7 }
 0x10d   : > { %v1281_v9 = vpop.eup %1280  ;;  %v446_v10 = vadd.f32 %v1768_v48, %v445_v8 }
 0x10e   : > { %v424_v11 = vpop.f32.mrf.mxu0  ;;  %v575_v12 = vmul.f32 %v1281_v9, %v1281_v9  ;;  %v492_v18 = vmul.f32 %v1281_v9, %v1774_v52 }
 0x10f   : > { %v1283_v13 = vpop.eup %1282  ;;  %1284 = vtanh.f32 %v446_v10  ;;  %v425_v14 = vadd.f32 %v1768_v48, %v424_v11 }
 0x110   : > { %v591_v15 = vsub.f32 1.0, %v575_v12  ;;  %v485_v16 = vmul.f32 %v1283_v13, %v1774_v52  ;;  %v568_v17 = vmul.f32 %v1283_v13, %v1283_v13 }
 0x111   : > { %1286 = vtanh.f32 %v425_v14 }
 0x112   : > { %657 = vmatmul.f32.gmra.mxu3 %v591_v15  ;;  %503 = vadd.xlane.f32.xlu1 %v485_v16  ;;  %v584_v19 = vsub.f32 1.0, %v568_v17 }
 0x113   : > { %517 = vadd.xlane.f32.xlu0 %v492_v18 }
 0x114   : > { %v448_v20 = vpop.f32.mrf.mxu2  ;;  %636 = vmatmul.f32.gmra.mxu1 %v584_v19  ;;  %v1807_v19 = vstv %s531_s24 }
 0x115   : > { %v1285_v21 = vpop.eup %1284  ;;  %v449_v22 = vadd.f32 %v1768_v48, %v448_v20 }
 0x116   : > { %v427_v23 = vpop.f32.mrf.mxu0  ;;  %v576_v24 = vmul.f32 %v1285_v21, %v1285_v21  ;;  %v493_v28 = vmul.f32 %v1285_v21, %v1774_v52 }
 0x117   : > { %v1287_v25 = vpop.eup %1286  ;;  %1288 = vtanh.f32 %v449_v22  ;;  %v428_v26 = vadd.f32 %v1768_v48, %v427_v23 }
 0x118   : > { %v592_v27 = vsub.f32 1.0, %v576_v24  ;;  %v569_v29 = vmul.f32 %v1287_v25, %v1287_v25  ;;  %v486_v37 = vmul.f32 %v1287_v25, %v1774_v52 }
 0x119   : > { %1290 = vtanh.f32 %v428_v26 }
 0x11a   : > { %660 = vmatmul.f32.gmra.mxu3 %v592_v27  ;;  %519 = vadd.xlane.f32.xlu1 %v493_v28  ;;  %v585_v30 = vsub.f32 1.0, %v569_v29 }
 0x11c   : > { %v451_v31 = vpop.f32.mrf.mxu2  ;;  %639 = vmatmul.f32.gmra.mxu1 %v585_v30 }
 0x11d   : > { %v1289_v32 = vpop.eup %1288  ;;  %v452_v33 = vadd.f32 %v1768_v48, %v451_v31 }
 0x11e   : > { %v430_v34 = vpop.f32.mrf.mxu0  ;;  %v494_v35 = vmul.f32 %v1289_v32, %v1774_v52  ;;  %v577_v36 = vmul.f32 %v1289_v32, %v1289_v32 }
 0x11f   : > { %v1291_v38 = vpop.eup %1290  ;;  %1292 = vtanh.f32 %v452_v33  ;;  %v431_v39 = vadd.f32 %v1768_v48, %v430_v34 }
 0x120   : > { %521 = vadd.xlane.f32.xlu2 %v494_v35  ;;  %v593_v40 = vsub.f32 1.0, %v577_v36  ;;  %v570_v41 = vmul.f32 %v1291_v38, %v1291_v38  ;;  %v487_v44 = vmul.f32 %v1291_v38, %v1774_v52 }
 0x121   : > { %1294 = vtanh.f32 %v431_v39 }
 0x122   : > { %663 = vmatmul.f32.gmra.mxu3 %v593_v40  ;;  %505 = vadd.xlane.f32.xlu1 %v486_v37  ;;  %v586_v42 = vsub.f32 1.0, %v570_v41 }
 0x124   : > { %v454_v43 = vpop.f32.mrf.mxu2  ;;  %642 = vmatmul.f32.gmra.mxu1 %v586_v42 }
 0x125   : > { %v1293_v45 = vpop.eup %1292  ;;  %v455_v46 = vadd.f32 %v1768_v48, %v454_v43 }
 0x126   : > { %v433_v47 = vpop.f32.mrf.mxu0  ;;  %v495_v49 = vmul.f32 %v1293_v45, %v1774_v52  ;;  %v578_v50 = vmul.f32 %v1293_v45, %v1293_v45 }
 0x127   : > { %v1295_v51 = vpop.eup %1294  ;;  %1296 = vtanh.f32 %v455_v46  ;;  %v434_v53 = vadd.f32 %v1768_v48, %v433_v47 }
 0x128   : > { %507 = vadd.xlane.f32.xlu2 %v487_v44  ;;  %523 = vadd.xlane.f32.xlu0 %v495_v49  ;;  %v594_v54 = vsub.f32 1.0, %v578_v50  ;;  %v571_v55 = vmul.f32 %v1295_v51, %v1295_v51  ;;  %v488_v58 = vmul.f32 %v1295_v51, %v1774_v52 }
 0x129   : > { %1298 = vtanh.f32 %v434_v53 }
 0x12a   : > { %666 = vmatmul.f32.gmra.mxu3 %v594_v54  ;;  %v587_v56 = vsub.f32 1.0, %v571_v55 }
 0x12c   : > { %v457_v57 = vpop.f32.mrf.mxu2  ;;  %645 = vmatmul.f32.gmra.mxu1 %v587_v56 }
 0x12d   : > { %v1297_v59 = vpop.eup %1296  ;;  %v458_v60 = vadd.f32 %v1768_v48, %v457_v57 }
 0x12e   : > { %v436_v61 = vpop.f32.mrf.mxu0  ;;  %v579_v62 = vmul.f32 %v1297_v59, %v1297_v59  ;;  %v496_v18 = vmul.f32 %v1297_v59, %v1774_v52 }
 0x12f   : > { %v1299_v63 = vpop.eup %1298  ;;  %1300 = vtanh.f32 %v458_v60  ;;  %v437_v0 = vadd.f32 %v1768_v48, %v436_v61 }
 0x130   : > { %509 = vadd.xlane.f32.xlu2 %v488_v58  ;;  %v595_v1 = vsub.f32 1.0, %v579_v62  ;;  %v489_v2 = vmul.f32 %v1299_v63, %v1774_v52  ;;  %v572_v3 = vmul.f32 %v1299_v63, %v1299_v63 }
 0x131   : > { %1302 = vtanh.f32 %v437_v0 }
 0x132   : > { %669 = vmatmul.f32.gmra.mxu3 %v595_v1  ;;  %511 = vadd.xlane.f32.xlu0 %v489_v2  ;;  %v588_v4 = vsub.f32 1.0, %v572_v3 }
 0x134   : > { %v460_v5 = vpop.f32.mrf.mxu2  ;;  %648 = vmatmul.f32.gmra.mxu1 %v588_v4 }
 0x135   : > { %v1301_v6 = vpop.eup %1300  ;;  %v461_v7 = vadd.f32 %v1768_v48, %v460_v5 }
 0x136   : > { %v497_v8 = vmul.f32 %v1301_v6, %v1774_v52  ;;  %v580_v9 = vmul.f32 %v1301_v6, %v1301_v6 }
 0x137   : > { %v1303_v10 = vpop.eup %1302  ;;  %1304 = vtanh.f32 %v461_v7 }
 0x138   : > { %527 = vadd.xlane.f32.xlu2 %v497_v8  ;;  %v596_v11 = vsub.f32 1.0, %v580_v9  ;;  %v490_v12 = vmul.f32 %v1303_v10, %v1774_v52  ;;  %v573_v13 = vmul.f32 %v1303_v10, %v1303_v10 }
 0x13a   : > { %672 = vmatmul.f32.gmra.mxu3 %v596_v11  ;;  %513 = vadd.xlane.f32.xlu1 %v490_v12  ;;  %v589_v14 = vsub.f32 1.0, %v573_v13 }
 0x13c   : > { %651 = vmatmul.f32.gmra.mxu1 %v589_v14 }
 0x13d   : > { %v1305_v15 = vpop.eup %1304 }
 0x13e   : > { %v498_v16 = vmul.f32 %v1305_v15, %v1774_v52  ;;  %v581_v17 = vmul.f32 %v1305_v15, %v1305_v15 }
 0x140   : > { %529 = vadd.xlane.f32.xlu0 %v498_v16  ;;  %v597_v48 = vsub.f32 1.0, %v581_v17 }
 0x142   : > { %675 = vmatmul.f32.gmra.mxu3 %v597_v48  ;;  %525 = vadd.xlane.f32.xlu1 %v496_v18 }
 0x175   : > { %v500_v20 = vpop.xlane.xlu0 %499 }
 0x176   : > { %v533_v21 = vadd.f32 %v1807_v19, %v500_v20 }
 0x178   : > { %550 = vst.msk [vmem:[%s1811_s12] sm:$0xff] %vm549_vm0, %v533_v21 }
 0x17b   : > { %v516_v52 = vpop.xlane.xlu2 %515 }
 0x17c   : > { %v541_v22 = vadd.f32 %v1807_v19, %v516_v52 }
 0x17d   : > { %v502_v23 = vpop.xlane.xlu0 %501 }
 0x17e   : > { %558 = vst.msk [vmem:[%s1811_s12 + $0x40] sm:$0xff] %vm549_vm0, %v541_v22  ;;  %v534_v24 = vadd.f32 %v1807_v19, %v502_v23 }
 0x180   : > { %551 = vst.msk [vmem:[%s1811_s12 + $0x8] sm:$0xff] %vm549_vm0, %v534_v24 }
 0x181   : > { %v631_v25 = vpop.f32.mrf.mxu1 }
 0x182   : > { %679 = vst [vmem:[%s1822_s17] sm:$0xff] %v631_v25 }
 0x185   : > { %v504_v26 = vpop.xlane.xlu1 %503 }
 0x186   : > { %v535_v27 = vadd.f32 %v1807_v19, %v504_v26  ;;  %v518_v28 = vpop.xlane.xlu0 %517 }
 0x187   : > { %v542_v29 = vadd.f32 %v1807_v19, %v518_v28 }
 0x188   : > { %552 = vst.msk [vmem:[%s1811_s12 + $0x10] sm:$0xff] %vm549_vm0, %v535_v27 }
 0x189   : > { %559 = vst.msk [vmem:[%s1811_s12 + $0x48] sm:$0xff] %vm549_vm0, %v542_v29  ;;  %v634_v30 = vpop.f32.mrf.mxu1 }
 0x18a   : > { %680 = vst [vmem:[%s1822_s17 + $0x8] sm:$0xff] %v634_v30 }
 0x18d   : > { %v655_v31 = vpop.f32.mrf.mxu3  ;;  %v520_v32 = vpop.xlane.xlu1 %519 }
 0x18e   : > { %687 = vst [vmem:[%s1822_s17 + $0x40] sm:$0xff] %v655_v31  ;;  %v543_v33 = vadd.f32 %v1807_v19, %v520_v32 }
 0x190   : > { %560 = vst.msk [vmem:[%s1811_s12 + $0x50] sm:$0xff] %vm549_vm0, %v543_v33 }
 0x191   : > { %v637_v34 = vpop.f32.mrf.mxu1 }
 0x192   : > { %681 = vst [vmem:[%s1822_s17 + $0x10] sm:$0xff] %v637_v34 }
 0x193   : > { %v522_v35 = vpop.xlane.xlu2 %521 }
 0x194   : > { %v544_v36 = vadd.f32 %v1807_v19, %v522_v35 }
 0x195   : > { %v658_v37 = vpop.f32.mrf.mxu3  ;;  %v506_v38 = vpop.xlane.xlu1 %505 }
 0x196   : > { %561 = vst.msk [vmem:[%s1811_s12 + $0x58] sm:$0xff] %vm549_vm0, %v544_v36  ;;  %v536_v39 = vadd.f32 %v1807_v19, %v506_v38 }
 0x197   : > { %688 = vst [vmem:[%s1822_s17 + $0x48] sm:$0xff] %v658_v37 }
 0x198   : > { %553 = vst.msk [vmem:[%s1811_s12 + $0x18] sm:$0xff] %vm549_vm0, %v536_v39 }
 0x199   : > { %v640_v40 = vpop.f32.mrf.mxu1 }
 0x19a   : > { %682 = vst [vmem:[%s1822_s17 + $0x18] sm:$0xff] %v640_v40 }
 0x19b   : > { %v508_v41 = vpop.xlane.xlu2 %507  ;;  %v524_v42 = vpop.xlane.xlu0 %523 }
 0x19c   : > { %v537_v43 = vadd.f32 %v1807_v19, %v508_v41  ;;  %v545_v44 = vadd.f32 %v1807_v19, %v524_v42 }
 0x19d   : > { %v661_v45 = vpop.f32.mrf.mxu3 }
 0x19e   : > { %554 = vst.msk [vmem:[%s1811_s12 + $0x20] sm:$0xff] %vm549_vm0, %v537_v43 }
 0x19f   : > { %562 = vst.msk [vmem:[%s1811_s12 + $0x60] sm:$0xff] %vm549_vm0, %v545_v44 }
 0x1a0   : > { %689 = vst [vmem:[%s1822_s17 + $0x50] sm:$0xff] %v661_v45 }
 0x1a1   : > { %v643_v46 = vpop.f32.mrf.mxu1 }
 0x1a2   : > { %683 = vst [vmem:[%s1822_s17 + $0x20] sm:$0xff] %v643_v46 }
 0x1a3   : > { %v510_v47 = vpop.xlane.xlu2 %509 }
 0x1a4   : > { %v538_v49 = vadd.f32 %v1807_v19, %v510_v47 }
 0x1a5   : > { %v664_v50 = vpop.f32.mrf.mxu3  ;;  %v512_v51 = vpop.xlane.xlu0 %511 }
 0x1a6   : > { %555 = vst.msk [vmem:[%s1811_s12 + $0x28] sm:$0xff] %vm549_vm0, %v538_v49  ;;  %v539_v53 = vadd.f32 %v1807_v19, %v512_v51 }
 0x1a7   : > { %690 = vst [vmem:[%s1822_s17 + $0x58] sm:$0xff] %v664_v50 }
 0x1a8   : > { %556 = vst.msk [vmem:[%s1811_s12 + $0x30] sm:$0xff] %vm549_vm0, %v539_v53 }
 0x1a9   : > { %v646_v54 = vpop.f32.mrf.mxu1 }
 0x1aa   : > { %684 = vst [vmem:[%s1822_s17 + $0x28] sm:$0xff] %v646_v54 }
 0x1ab   : > { %v528_v55 = vpop.xlane.xlu2 %527 }
 0x1ac   : > { %v547_v56 = vadd.f32 %v1807_v19, %v528_v55 }
 0x1ad   : > { %v667_v57 = vpop.f32.mrf.mxu3  ;;  %v514_v58 = vpop.xlane.xlu1 %513 }
 0x1ae   : > { %564 = vst.msk [vmem:[%s1811_s12 + $0x70] sm:$0xff] %vm549_vm0, %v547_v56  ;;  %v540_v59 = vadd.f32 %v1807_v19, %v514_v58 }
 0x1af   : > { %691 = vst [vmem:[%s1822_s17 + $0x60] sm:$0xff] %v667_v57 }
 0x1b0   : > { %557 = vst.msk [vmem:[%s1811_s12 + $0x38] sm:$0xff] %vm549_vm0, %v540_v59 }
 0x1b1   : > { %v649_v60 = vpop.f32.mrf.mxu1 }
 0x1b2   : > { %685 = vst [vmem:[%s1822_s17 + $0x30] sm:$0xff] %v649_v60 }
 0x1b3   : > { %v530_v61 = vpop.xlane.xlu0 %529 }
 0x1b4   : > { %v548_v62 = vadd.f32 %v1807_v19, %v530_v61 }
 0x1b5   : > { %v670_v63 = vpop.f32.mrf.mxu3  ;;  %v526_v0 = vpop.xlane.xlu1 %525 }
 0x1b6   : > { %565 = vst.msk [vmem:[%s1811_s12 + $0x78] sm:$0xff] %vm549_vm0, %v548_v62  ;;  %v546_v1 = vadd.f32 %v1807_v19, %v526_v0 }
 0x1b7   : > { %692 = vst [vmem:[%s1822_s17 + $0x68] sm:$0xff] %v670_v63 }
 0x1b8   : > { %563 = vst.msk [vmem:[%s1811_s12 + $0x68] sm:$0xff] %vm549_vm0, %v546_v1 }
 0x1b9   : > { %v652_v2 = vpop.f32.mrf.mxu1 }
 0x1ba   : > { %686 = vst [vmem:[%s1822_s17 + $0x38] sm:$0xff] %v652_v2 }
 0x1bd   : > { %v673_v3 = vpop.f32.mrf.mxu3 }
 0x1be   : > { %693 = vst [vmem:[%s1822_s17 + $0x70] sm:$0xff] %v673_v3 }
 0x1c2   : > { %706 = sbr.rel (!%p1657_p11) target bundleno = 503 (0x1f7), region = 60 }
 0x1c5   : > { %v676_v4 = vpop.f32.mrf.mxu3 }
 0x1c6   : > { %694 = vst [vmem:[%s1822_s17 + $0x78] sm:$0xff] %v676_v4 }
 0x1c7   : > { %s2079_s21 = smov (!%p709_p6, %s708_s21), 16 }
 0x1c8   : > { %s1084_s19 = sshll.u32 %s2079_s21, 3 }
 0x1c9   : > { %p1087_p13 = scmp.eq.s32.totalorder %s1084_s19, 0 }
 0x1ca   : > { %s1893_s10 = sshrl.u32 (!%p1087_p13), %s2079_s21, 4 }
 0x1cb   : > { %717 = sbr.rel (%p1087_p13) target bundleno = 503 (0x1f7), region = 64  ;;  %p1088_p2 = scmp.le.s32.totalorder (!%p1087_p13), %s1893_s10, 0 }
 0x1d0   : > { %989 = sbr.rel (%p1088_p2) target bundleno = 486 (0x1e6), region = 163  ;;  %s2062_s1 = smov (!%p1088_p2), %s1887_s20 }
 0x1d1   : > { %s2063_s13 = smov (!%p1088_p2), %s1811_s12  ;;  %s1902_s16 = smov (!%p1088_p2), 0  }
 0x1d2   : > { %s1904_s22 = smov (!%p1088_p2), 0  }
 0x1d5 LB: >> { %v810_v5 = vld [vmem:[%s1526_s13] sm:$0xff]  ;;  %v812_v6 = vld [vmem:[%s1526_s13 + $0x8] sm:$0xff]  ;;  %v814_v7 = vld [vmem:[%s1526_s13 + $0x10] sm:$0xff]  ;;  %s842_s24 = sadd.s32 1, %s1530_s16  ;;  %s804_s22 = sadd.s32 1, %s1534_s22   ;;  %s1534_s22 = sphi %s1904_s22, %s804_s22   ;;  %s1530_s16 = sphi %s1902_s16, %s2066_s16   ;;  %s1526_s13 = sphi %s2063_s13, %s2065_s13   ;;  %s1522_s1 = sphi %s2062_s1, %s2064_s1  }
 0x1d6   : >> { %811 = vst [vmem:[%s1522_s1] sm:$0xff] %v810_v5  ;;  %v816_v8 = vld [vmem:[%s1526_s13 + $0x18] sm:$0xff]  ;;  %p843_p5 = scmp.ge.s32.totalorder %s842_s24, %s1893_s10  ;;  %v818_v9 = vld [vmem:[%s1526_s13 + $0x20] sm:$0xff]  ;;  %v820_v10 = vld [vmem:[%s1526_s13 + $0x28] sm:$0xff]  ;;  %p803_p9 = scmp.ge.s32.totalorder %s804_s22, %s1893_s10 }
 0x1d7   : >> { %813 = vst [vmem:[%s1522_s1 + $0x8] sm:$0xff] %v812_v6  ;;  %v822_v11 = vld [vmem:[%s1526_s13 + $0x30] sm:$0xff]  ;;  %v824_v12 = vld [vmem:[%s1526_s13 + $0x38] sm:$0xff]  ;;  %v826_v13 = vld [vmem:[%s1526_s13 + $0x40] sm:$0xff] }
 0x1d8   : >> { %815 = vst [vmem:[%s1522_s1 + $0x10] sm:$0xff] %v814_v7  ;;  %s2081_s24 = smov (%p843_p5, %s842_s24), 0  ;;  %v828_v14 = vld [vmem:[%s1526_s13 + $0x48] sm:$0xff]  ;;  %v830_v15 = vld [vmem:[%s1526_s13 + $0x50] sm:$0xff]  ;;  %v832_v16 = vld [vmem:[%s1526_s13 + $0x58] sm:$0xff] }
 0x1d9   : >> { %817 = vst [vmem:[%s1522_s1 + $0x18] sm:$0xff] %v816_v8  ;;  %s1089_s9 = sshll.u32 %s2081_s24, 7  ;;  %v834_v17 = vld [vmem:[%s1526_s13 + $0x60] sm:$0xff]  ;;  %v836_v48 = vld [vmem:[%s1526_s13 + $0x68] sm:$0xff]  ;;  %v838_v18 = vld [vmem:[%s1526_s13 + $0x70] sm:$0xff]  ;;  %s2066_s16 = smov %s2081_s24 }
 0x1da   : >> { %819 = vst [vmem:[%s1522_s1 + $0x20] sm:$0xff] %v818_v9  ;;  %s847_s30 = scalar_lea.vmem %s1811_s12, %s1089_s9 [#allocation9]   ;;  %s848_s23 = scalar_lea.vmem %s1887_s20, %s1089_s9   ;;  %v840_v19 = vld [vmem:[%s1526_s13 + $0x78] sm:$0xff] }
 0x1db   : >> { %821 = vst [vmem:[%s1522_s1 + $0x28] sm:$0xff] %v820_v10  ;;  %s2065_s13 = smov %s847_s30 }
 0x1dc   : >> { %823 = vst [vmem:[%s1522_s1 + $0x30] sm:$0xff] %v822_v11 }
 0x1dd   : >> { %825 = vst [vmem:[%s1522_s1 + $0x38] sm:$0xff] %v824_v12 }
 0x1de   : >> { %827 = vst [vmem:[%s1522_s1 + $0x40] sm:$0xff] %v826_v13 }
 0x1df   : >> { %829 = vst [vmem:[%s1522_s1 + $0x48] sm:$0xff] %v828_v14 }
 0x1e0   : >> { %831 = vst [vmem:[%s1522_s1 + $0x50] sm:$0xff] %v830_v15 }
 0x1e1   : >> { %833 = vst [vmem:[%s1522_s1 + $0x58] sm:$0xff] %v832_v16  ;;  %806 = sbr.rel (!%p803_p9) target bundleno = 469 (0x1d5), region = 169 }
 0x1e2   : >> { %835 = vst [vmem:[%s1522_s1 + $0x60] sm:$0xff] %v834_v17 }
 0x1e3   : >> { %837 = vst [vmem:[%s1522_s1 + $0x68] sm:$0xff] %v836_v48 }
 0x1e4   : >> { %839 = vst [vmem:[%s1522_s1 + $0x70] sm:$0xff] %v838_v18 }
 0x1e5   : >> { %841 = vst [vmem:[%s1522_s1 + $0x78] sm:$0xff] %v840_v19  ;;  %s2064_s1 = smov %s848_s23 }
 0x1e6 PF: > { %s1966_s25 = sand.u32 15, %s2079_s21   ;;  %s1107_s19 = sshll.u32 %s1893_s10, 7 }
 0x1e7   : > { %s853_s9 = scalar_lea.vmem %s1811_s12, %s1107_s19 [#allocation9]   ;;  %s855_s18 = scalar_lea.vmem %s1887_s20, %s1107_s19  }
 0x1e8   : > { %p1094_p10 = scmp.le.s32.totalorder %s1966_s25, 0 }
 0x1e9   : > { %s1536_s23 = smov (!%p1094_p10), %s855_s18   ;;  %s1540_s30 = smov (!%p1094_p10), %s853_s9  }
 0x1ea   : > { %1003 = sbr.rel (%p1094_p10) target bundleno = 503 (0x1f7), region = 174  ;;  %s1544_s0 = smov (!%p1094_p10), 0  }
 0x1eb   : > { %s1548_s24 = smov (!%p1094_p10), 0  }
 0x1ef LB: >> { %v865_v20 = vld [vmem:[%s1542_s30] sm:$0xff]  ;;  %s867_s21 = sadd.s32 1, %s1546_s0  ;;  %s859_s24 = sadd.s32 1, %s1550_s24   ;;  %s1550_s24 = sphi %s1548_s24, %s859_s24   ;;  %s1546_s0 = sphi %s1544_s0, %s1545_s0   ;;  %s1542_s30 = sphi %s1540_s30, %s872_s30   ;;  %s1538_s23 = sphi %s1536_s23, %s873_s23  }
 0x1f0   : >> { %866 = vst [vmem:[%s1538_s23] sm:$0xff] %v865_v20  ;;  %p868_p1 = scmp.ge.s32.totalorder %s867_s21, %s1966_s25  ;;  %p858_p0 = scmp.ge.s32.totalorder %s859_s24, %s1966_s25 }
 0x1f2   : >> { %s2083_s21 = smov (%p868_p1, %s867_s21), 0  ;;  %861 = sbr.rel (!%p858_p0) target bundleno = 495 (0x1ef), region = 180 }
 0x1f3   : >> { %s1095_s12 = sshll.u32 %s2083_s21, 3  ;;  %s1545_s0 = smov %s2083_s21  }
 0x1f4   : >> { %s872_s30 = scalar_lea.vmem %s853_s9, %s1095_s12 [#allocation9]   ;;  %s873_s23 = scalar_lea.vmem %s855_s18, %s1095_s12  }
 0x1f7 PF: > { %879 = sbr.rel (!%p1657_p11) target bundleno = 540 (0x21c), region = 112  ;;  %s1097_s0 = sshll.u32 (%p1657_p11), %s1626_s5, 4 }
 0x1f8   : > { %s881_s20 = ssub.s32 (%p1657_p11), 25, %s1097_s0  ;;  %s2067_s16 = scalar_lea.sflag (%p1657_p11), [#allocation5], %s1732_s3 }
 0x1f9   : > { %p882_p3 = scmp.lt.s32.totalorder (%p1657_p11), %s881_s20, 16 }
 0x1fc   : > { %s2085_s20 = smov (!%p882_p3, %s881_s20), 16 }
 0x1fd   : > { %s1098_s10 = sshll.u32 %s2085_s20, 3 }
 0x1fe   : > { %s885_s1 = ssub.s32 128, %s1098_s10 }
 0x1ff   : > { %s886_s13 = sshll.u32 %s885_s1, 4 }
 0x200   : > { %887 = vsyncadd %s2067_s16, %s886_s13  ;;  %p1982_p7 = scmp.ne.s32.totalorder %s1098_s10, 0  ;;  %s1109_s18 = sshll.u32 %s1626_s5, 7 }
 0x201   : > { %s890_s19 = scalar_lea.hbm %s2043_s7, %s1109_s18  ;;  %s892_s9 = sshll.u32 %s1822_s17, 4  ;;  %s1991_s9 = int_to_ptr.vmem [resolvable:$true] %s892_s9 }
 0x202   : > { %s894_s23 = sshll.u32 %s890_s19, 4  ;;  %s1102_s30 = sshll.u32 %s2085_s20, 7  ;;  %s1993_s23 = int_to_ptr.hbm [resolvable:$true] %s894_s23 }
 0x203   : > { %s1405_s24 = sshra.s32 %s1991_s9, 4  ;;  %s1407_s21 = sshrl.u32 %s1102_s30, 4  ;;  %s1406_s24 = int_to_ptr.vmem [resolvable:$true] %s1405_s24 }
 0x204   : > { %s1412_s12 = scalar_lea.vmem %s1406_s24, %s1407_s21  ;;  %s1559_s5 = smov [#allocation10]  }
 0x205   : > { %p1413_p11 = scmp.ne.s32.totalorder %s1406_s24, %s1412_s12  ;;  %s1416_s0 = scalar_lea.vmem %s1559_s5, 256 }
 0x206   : > { %p1418_p12 = scmp.lt.s32.totalorder %s1416_s0, %s1412_s12 }
 0x207   : > { %p1414_p8 = pnand %p1413_p11, %p1982_p7 }
 0x209   : > { %p1415_p4 = pneg %p1414_p8 }
 0x20b   : > { %p1420_p6 = pnand %p1418_p12, %p1415_p4 }
 0x20d   : > { %1423 = shalt.err (!%p1420_p6)
}
 0x20e   : > { %s1424_s17 = sshra.s32 %s1993_s23, 4  ;;  %s1435_s16 = scalar_lea.hbm %s2043_s7, 200  ;;  %s1425_s17 = int_to_ptr.hbm [resolvable:$true] %s1424_s17 }
 0x20f   : > { %s1431_s10 = scalar_lea.hbm %s1425_s17, %s1407_s21  ;;  %p1436_p9 = scmp.lt.s32.totalorder %s1425_s17, %s2043_s7 }
 0x210   : > { %p1432_p13 = scmp.ne.s32.totalorder %s1425_s17, %s1431_s10  ;;  %p1437_p10 = scmp.lt.s32.totalorder %s1435_s16, %s1431_s10 }
 0x212   : > { %p1433_p2 = pnand %p1432_p13, %p1982_p7  ;;  %p1438_p1 = por %p1437_p10, %p1436_p9 }
 0x214   : > { %p1434_p5 = pneg %p1433_p2 }
 0x216   : > { %p1439_p0 = pnand %p1438_p1, %p1434_p5 }
 0x218   : > { %1442 = shalt.err (!%p1439_p0)
}
 0x219   : > { %s1560_s25 = smov 128   ;;  %s1561_s19 = smov 8  }
 0x21a   : > { %s2069_s24 = scalar_lea.sflag [#allocation5], %s1732_s3 }
 0x21b   : > { %900 = dma.vmem_to_hbm [thread:$0]  (%p1982_p7), %s1991_s9, %s1102_s30, %s1993_s23, %s2069_s24, %s1560_s25, %s1560_s25, %s1561_s19  }
 0x21c PF: > { %s916_s21 = sand.u32 1, %s1506_s26   ;;  %p2070_p3 = scmp.ne.s32.totalorder %s2053_s15, 0 }
 0x21d   : > { %p2071_p11 = scmp.ge.s32.totalorder %s1518_s29, 2  ;;  %s917_s12 = scalar_lea.sflag [#allocation5], %s916_s21 }
 0x21f   : > { %p1160_p8 = pnand %p2071_p11, %p2070_p3 }
 0x221   : > { %p1161_p4 = pneg %p1160_p8 }
 0x223   : > { %1501 = dma.done.wait (%p1161_p4), %s917_s12, 2048  }
 0x224   : > { %1503 = vsyncadd (%p1161_p4), %s917_s12, 4294965248  ;;  %p23_p12 = scmp.ge.s32.totalorder %s1630_s8, 4   ;;  %s2072_s26 = smov %s1510_s27 }
 0x225   : > { %s2073_s27 = smov %s1514_s28  ;;  %s2074_s28 = smov %s1642_s11 }
 0x226   : > { %s2075_s29 = smov %s1630_s8  ;;  %25 = sbr.rel (!%p23_p12) target bundleno = 11 (0xb), region = 191 }
 0x22b   :  { %923 = vsyncpa [#allocation4], 1 }
 0x22c   :  { %925 = vsyncpa [#allocation4 + $0x1], 1 }
 0x22d   :  { %926 = vsyncpa [#allocation7], 1 }
 0x22e   :  { %927 = vsyncpa [#allocation5], 1 }
 0x22f   :  { %929 = vsyncpa [#allocation5 + $0x1], 1 }

// kernel: tpu_custom_call.1
= control target key start
LH: loop header
LB: loop body
LE: loop exit
PB: predicated region body
PF: predicated region fallthrough
CT: control target
= control target key end

     0   :  { %s2036_s0 = inlined_call_operand.hbm [shape: f32[200,128], index: 0, kind: input, shape index: {}]   ;;  %s2037_s1 = inlined_call_operand.hbm [shape: f32[128,128], index: 1, kind: input, shape index: {}]   ;;  %s2038_s2 = inlined_call_operand.vmem [shape: f32[1,128], index: 2, kind: input, shape index: {}]   ;;  %s2039_s3 = inlined_call_operand.hbm [shape: f32[128,128], index: 3, kind: input, shape index: {}]   ;;  %s2040_s4 = inlined_call_operand.vmem [shape: f32[1,128], index: 4, kind: input, shape index: {}]   ;;  %s2041_s5 = inlined_call_operand.<no memory space> [shape: f32[1,1], index: 5, kind: input, shape index: {}]   ;;  %s2042_s6 = inlined_call_operand.vmem [shape: f32[200,1], index: 6, kind: output, shape index: {0}]   ;;  %s2043_s7 = inlined_call_operand.hbm [shape: f32[200,128], index: 7, kind: output, shape index: {1}]  }
   0x1   :  { %2047 = sst [smem:[#allocation14_spill]] %s2036_s0 }
   0x2   :  { %2048 = sst [smem:[#allocation15_spill]] %s2037_s1 }
   0x3   :  { %2049 = sst [smem:[#allocation16_spill]] %s2039_s3 }
   0x4   :  { %13 = sst [smem:[#allocation2]] %s2041_s5 }
   0x5   :  { %14 = vsyncpa [#allocation4], 0 }
   0x6   :  { %16 = vsyncpa [#allocation4 + $0x1], 0 }
   0x7   :  { %17 = vsyncpa [#allocation7], 0 }
   0x8   :  { %18 = vsyncpa [#allocation5], 0 }
   0x9   :  { %20 = vsyncpa [#allocation5 + $0x1], 0  ;;  %s1605_s26 = smov 0   ;;  %s1607_s27 = smov 0  }
   0xa   :  { %s1609_s28 = smov 0   ;;  %s1611_s29 = smov 0  }
   0xb LB: > { %s1626_s5 = sadd.s32 4294967295, %s1518_s29   ;;  %s1063_s30 = sadd.s32 4294967294, %s1518_s29   ;;  %s1518_s29 = sphi %s1611_s29, %s2075_s29   ;;  %s1514_s28 = sphi %s1609_s28, %s2074_s28   ;;  %s1510_s27 = sphi %s1607_s27, %s2073_s27   ;;  %s1506_s26 = sphi %s1605_s26, %s2072_s26  }
   0xc   : > { %s1630_s8 = sadd.s32 1, %s1518_s29   ;;  %s33_s9 = sadd.s32 1, %s1514_s28 }
   0xd   : > { %s30_s10 = ssub.s32 %s1518_s29, %s1630_s8  ;;  %p40_p0 = scmp.ne.s32.totalorder %s1514_s28, %s1510_s27 }
   0xe   : > { %p31_p1 = scmp.eq.s32.totalorder %s30_s10, 0  ;;  %p41_p2 = scmp.eq.s32.totalorder %s1518_s29, 0 }
   0xf   : > { %p46_p3 = scmp.ne.s32.totalorder %s1510_s27, %s1506_s26  ;;  %p2046_p4 = scmp.eq.s32.totalorder %s1626_s5, 0 }
  0x10   : > { %s1642_s11 = scalar_select %p31_p1, %s1514_s28, %s33_s9  }
  0x11   : > { %p1644_p5 = por %p41_p2, %p40_p0  ;;  %p1650_p6 = por %p2046_p4, %p46_p3 }
  0x12   : > { %p175_p7 = scmp.eq.s32.totalorder %s1626_s5, 1  ;;  %p207_p8 = scmp.eq.s32.totalorder %s1063_s30, 1 }
  0x13   : > { %p1064_p9 = scmp.ge.s32.totalorder %s1518_s29, 1  ;;  %p214_p10 = scmp.lt.s32.totalorder %s1518_s29, 3 }
  0x14   : > { %p1657_p11 = por %p175_p7, %p40_p0  ;;  %p1661_p12 = por %p207_p8, %p46_p3 }
  0x15   : > { %p1665_p13 = pnand %p1064_p9, %p214_p10  ;;  %s2055_s1 = sld [smem:[#allocation15_spill]] }
  0x16   : > { %s2053_s15 = scalar_select %p1661_p12, 1, 0 }
  0x17   : > { %p1152_p1 = pneg %p1665_p13  ;;  %s1552_s20 = smov [#allocation6]  }
  0x18   : > { %s227_s21 = sshll.u32 %s1552_s20, 4  ;;  %s2056_s3 = sld [smem:[#allocation16_spill]]  ;;  %s228_s21 = int_to_ptr.vmem [resolvable:$true] %s227_s21 }
  0x19   : > { %p1153_p0 = pnand %p1152_p1, %p2046_p4  ;;  %s1553_s25 = smov 128  }
  0x1a   : > { %s1554_s30 = smov 8   ;;  %s1555_s9 = smov [#allocation8]  }
  0x1b   : > { %s225_s19 = sshll.u32 %s2055_s1, 4  ;;  %s244_s10 = sshll.u32 %s1555_s9, 4  ;;  %s226_s19 = int_to_ptr.hbm [resolvable:$true] %s225_s19  ;;  %s245_s10 = int_to_ptr.vmem [resolvable:$true] %s244_s10 }
  0x1c   : > { %1155 = dma.hbm_to_vmem [thread:$0]  (!%p1153_p0), %s226_s19, 2048, %s228_s21, [#allocation7], %s1553_s25, %s1553_s25, %s1554_s30  }
  0x1d   : > { %p2045_p2 = scmp.ge.s32.totalorder %s1518_s29, 2 }
  0x1e   : > { %s242_s24 = sshll.u32 %s2056_s3, 4  ;;  %s243_s24 = int_to_ptr.hbm [resolvable:$true] %s242_s24 }
  0x1f   : > { %1158 = dma.hbm_to_vmem [thread:$0]  (!%p1153_p0), %s243_s24, 2048, %s245_s10, [#allocation7], %s1553_s25, %s1553_s25, %s1554_s30  }
  0x20   : > { %260 = sbr.rel (%p2045_p2) target bundleno = 80 (0x50), region = 36 }
  0x25   : > { %263 = sbr.rel (!%p1644_p5) target bundleno = 80 (0x50), region = 40  ;;  %s264_s17 = sand.u32 (%p1644_p5), 1, %s1514_s28  }
  0x26   : > { %s1069_s18 = sshll.u32 (%p1644_p5), %s1518_s29, 4  ;;  %s1068_s20 = sshll.u32 (%p1644_p5), %s264_s17, 7 }
  0x27   : > { %s270_s22 = ssub.s32 (%p1644_p5), 25, %s1069_s18  ;;  %s1689_s24 = scalar_lea.sflag (%p1644_p5), [#allocation4], %s264_s17 }
  0x28   : > { %p271_p3 = scmp.lt.s32.totalorder (%p1644_p5), %s270_s22, 16  ;;  %s268_s25 = scalar_lea.vmem (%p1644_p5), [#allocation3], %s1068_s20 }
  0x2a   : > { %s2077_s22 = smov (!%p271_p3, %s270_s22), 16 }
  0x2b   : > { %s1070_s19 = sshll.u32 %s2077_s22, 3 }
  0x2c   : > { %s274_s21 = ssub.s32 128, %s1070_s19 }
  0x2d   : > { %s275_s23 = sshll.u32 %s274_s21, 4 }
  0x2e   : > { %276 = vsyncadd %s1689_s24, %s275_s23  ;;  %p1692_p5 = scmp.ne.s32.totalorder %s1070_s19, 0  ;;  %s1105_s30 = sshll.u32 %s1518_s29, 7 }
  0x2f   : > { %s2058_s0 = sld [smem:[#allocation14_spill]]  ;;  %s1700_s1 = sshll.u32 %s268_s25, 4  ;;  %s284_s1 = int_to_ptr.vmem [resolvable:$true] %s1700_s1 }
  0x30   : > { %s2044_s20 = sshll.u32 %s2077_s22, 7 }
  0x31   : > { %s1368_s19 = sshrl.u32 %s2044_s20, 4 }
  0x35   : > { %s279_s18 = scalar_lea.hbm %s2058_s0, %s1105_s30  ;;  %s1377_s25 = scalar_lea.hbm %s2058_s0, 200 }
  0x36   : > { %s281_s17 = sshll.u32 %s279_s18, 4  ;;  %s1703_s17 = int_to_ptr.hbm [resolvable:$true] %s281_s17 }
  0x37   : > { %s1366_s21 = sshra.s32 %s1703_s17, 4  ;;  %s1367_s21 = int_to_ptr.hbm [resolvable:$true] %s1366_s21 }
  0x38   : > { %s1373_s23 = scalar_lea.hbm %s1367_s21, %s1368_s19  ;;  %p1378_p10 = scmp.lt.s32.totalorder %s1367_s21, %s2058_s0 }
  0x39   : > { %p1374_p7 = scmp.ne.s32.totalorder %s1367_s21, %s1373_s23  ;;  %p1379_p1 = scmp.lt.s32.totalorder %s1377_s25, %s1373_s23 }
  0x3b   : > { %p1375_p8 = pnand %p1374_p7, %p1692_p5  ;;  %p1380_p0 = por %p1379_p1, %p1378_p10 }
  0x3d   : > { %p1376_p9 = pneg %p1375_p8 }
  0x3f   : > { %p1381_p3 = pnand %p1380_p0, %p1376_p9 }
  0x41   : > { %1384 = shalt.err (!%p1381_p3)
}
  0x42   : > { %s1385_s20 = sshra.s32 %s284_s1, 4  ;;  %s1556_s9 = smov [#allocation3]   ;;  %s1386_s20 = int_to_ptr.vmem [resolvable:$true] %s1385_s20 }
  0x43   : > { %s1392_s3 = scalar_lea.vmem %s1386_s20, %s1368_s19  ;;  %s1396_s30 = scalar_lea.vmem %s1556_s9, 256 }
  0x44   : > { %p1393_p7 = scmp.ne.s32.totalorder %s1386_s20, %s1392_s3  ;;  %p1398_p4 = scmp.lt.s32.totalorder %s1396_s30, %s1392_s3 }
  0x46   : > { %p1394_p8 = pnand %p1393_p7, %p1692_p5 }
  0x48   : > { %p1395_p2 = pneg %p1394_p8 }
  0x4a   : > { %p1400_p12 = pnand %p1398_p4, %p1395_p2 }
  0x4c   : > { %1403 = shalt.err (!%p1400_p12)
}
  0x4d   : > { %s1557_s21 = smov 128   ;;  %s1558_s23 = smov 8  }
  0x4e   : > { %s2059_s25 = sshll.u32 %s2077_s22, 7 }
  0x4f   : > { %289 = dma.hbm_to_vmem [thread:$0]  (%p1692_p5), %s1703_s17, %s2059_s25, %s284_s1, %s1689_s24, %s1557_s21, %s1557_s21, %s1558_s23  }
  0x50 PF: > { %295 = sbr.rel (%p1665_p13) target bundleno = 540 (0x21c), region = 44  ;;  %s1732_s3 = sand.u32 (!%p1665_p13), 1, %s1510_s27  }
  0x51   : > { %s1735_s20 = sshll.u32 (!%p1665_p13), %s1732_s3, 7  ;;  %s298_s19 = scalar_lea.sflag (!%p1665_p13), [#allocation4], %s1732_s3 }
  0x52   : > { %s1739_s10 = scalar_lea.vmem (!%p1665_p13), [#allocation3], %s1735_s20 }
  0x55   : > { %1493 = dma.done.wait (%p1650_p6), %s298_s19, 2048  }
  0x56   : > { %1495 = vsyncadd (%p1650_p6), %s298_s19, 4294965248  ;;  %p2060_p4 = scmp.eq.s32.totalorder %s1626_s5, 0 }
  0x58   : > { %1497 = dma.done.wait (%p2060_p4), [#allocation7], 4096   ;;  %p2061_p12 = pmov %p2060_p4 }
  0x59   : > { %v393_v0 = vld [vmem:[#allocation6 + $0x78] sm:$0xff]  ;;  %v392_v1 = vld [vmem:[#allocation6 + $0x70] sm:$0xff]  ;;  %v391_v2 = vld [vmem:[#allocation6 + $0x68] sm:$0xff]  ;;  %s531_s24 = sld [smem:[#allocation2]]  ;;  %vm549_vm0 = vcmask 7168   ;;  %s1811_s12 = scalar_lea.vmem [#allocation9], %s1735_s20  }
  0x5a   : > { %1499 = vsyncadd (%p2061_p12), [#allocation7], 4294963200  ;;  %398 = vmatpush.msra.mxu0 %v393_v0  ;;  %1110 = vmatpush.msra.mxu2 %v393_v0  ;;  %v390_v3 = vld [vmem:[#allocation6 + $0x60] sm:$0xff]  ;;  %v389_v4 = vld [vmem:[#allocation6 + $0x58] sm:$0xff]  ;;  %s1822_s17 = scalar_lea.vmem [#allocation10], %s1735_s20  ;;  %s1083_s9 = sshll.u32 (%p1657_p11), %s1626_s5, 4 }
  0x5b   : > { %v388_v5 = vld [vmem:[#allocation6 + $0x50] sm:$0xff]  ;;  %v387_v6 = vld [vmem:[#allocation6 + $0x48] sm:$0xff]  ;;  %v386_v7 = vld [vmem:[#allocation6 + $0x40] sm:$0xff]  ;;  %s1106_s30 = sshll.u32 (%p1657_p11), %s1626_s5, 7  ;;  %s708_s21 = ssub.s32 (%p1657_p11), 25, %s1083_s9 }
  0x5c   : > { %399 = vmatpush.msra.mxu0 %v392_v1  ;;  %1111 = vmatpush.msra.mxu2 %v392_v1  ;;  %v385_v8 = vld [vmem:[#allocation6 + $0x38] sm:$0xff]  ;;  %v384_v9 = vld [vmem:[#allocation6 + $0x30] sm:$0xff]  ;;  %v383_v10 = vld [vmem:[#allocation6 + $0x28] sm:$0xff]  ;;  %s1887_s20 = scalar_lea.vmem (%p1657_p11), %s2042_s6, %s1106_s30   ;;  %p709_p6 = scmp.lt.s32.totalorder (%p1657_p11), %s708_s21, 16 }
  0x5d   : > { %v382_v11 = vld [vmem:[#allocation6 + $0x20] sm:$0xff]  ;;  %v381_v12 = vld [vmem:[#allocation6 + $0x18] sm:$0xff]  ;;  %v380_v13 = vld [vmem:[#allocation6 + $0x10] sm:$0xff] }
  0x5e   : > { %400 = vmatpush.msra.mxu0 %v391_v2  ;;  %1112 = vmatpush.msra.mxu2 %v391_v2  ;;  %v379_v14 = vld [vmem:[#allocation6 + $0x8] sm:$0xff]  ;;  %v378_v15 = vld [vmem:[#allocation6] sm:$0xff]  ;;  %v364_v20 = vld [vmem:[%s1739_s10 + $0x10] sm:$0xff] }
  0x5f   : > { %v362_v16 = vld [vmem:[%s1739_s10] sm:$0xff]  ;;  %v363_v18 = vld [vmem:[%s1739_s10 + $0x8] sm:$0xff]  ;;  %v372_v21 = vld [vmem:[%s1739_s10 + $0x50] sm:$0xff] }
  0x60   : > { %401 = vmatpush.msra.mxu0 %v390_v3  ;;  %1113 = vmatpush.msra.mxu2 %v390_v3  ;;  %v370_v17 = vld [vmem:[%s1739_s10 + $0x40] sm:$0xff]  ;;  %v371_v19 = vld [vmem:[%s1739_s10 + $0x48] sm:$0xff]  ;;  %v365_v22 = vld [vmem:[%s1739_s10 + $0x18] sm:$0xff] }
  0x61   : > { %v373_v23 = vld [vmem:[%s1739_s10 + $0x58] sm:$0xff]  ;;  %v612_v25 = vld [vmem:[#allocation8 + $0x70] sm:$0xff]  ;;  %v611_v26 = vld [vmem:[#allocation8 + $0x68] sm:$0xff] }
  0x62   : > { %402 = vmatpush.msra.mxu0 %v389_v4  ;;  %1114 = vmatpush.msra.mxu2 %v389_v4  ;;  %v613_v24 = vld [vmem:[#allocation8 + $0x78] sm:$0xff]  ;;  %v610_v27 = vld [vmem:[#allocation8 + $0x60] sm:$0xff]  ;;  %v608_v31 = vld [vmem:[#allocation8 + $0x50] sm:$0xff] }
  0x63   : > { %1126 = vmatpush.msra.mxu3 %v613_v24  ;;  %614 = vmatpush.msra.mxu1 %v613_v24  ;;  %v366_v28 = vld [vmem:[%s1739_s10 + $0x20] sm:$0xff]  ;;  %v609_v30 = vld [vmem:[#allocation8 + $0x58] sm:$0xff]  ;;  %v367_v32 = vld [vmem:[%s1739_s10 + $0x28] sm:$0xff] }
  0x64   : > { %403 = vmatpush.msra.mxu0 %v388_v5  ;;  %1115 = vmatpush.msra.mxu2 %v388_v5  ;;  %v374_v29 = vld [vmem:[%s1739_s10 + $0x60] sm:$0xff]  ;;  %v375_v33 = vld [vmem:[%s1739_s10 + $0x68] sm:$0xff]  ;;  %v368_v34 = vld [vmem:[%s1739_s10 + $0x30] sm:$0xff] }
  0x65   : > { %1127 = vmatpush.msra.mxu3 %v612_v25  ;;  %615 = vmatpush.msra.mxu1 %v612_v25  ;;  %v376_v35 = vld [vmem:[%s1739_s10 + $0x70] sm:$0xff]  ;;  %v369_v36 = vld [vmem:[%s1739_s10 + $0x38] sm:$0xff]  ;;  %v607_v38 = vld [vmem:[#allocation8 + $0x48] sm:$0xff] }
  0x66   : > { %404 = vmatpush.msra.mxu0 %v387_v6  ;;  %1116 = vmatpush.msra.mxu2 %v387_v6  ;;  %v377_v37 = vld [vmem:[%s1739_s10 + $0x78] sm:$0xff]  ;;  %v606_v39 = vld [vmem:[#allocation8 + $0x40] sm:$0xff]  ;;  %v604_v41 = vld [vmem:[#allocation8 + $0x30] sm:$0xff] }
  0x67   : > { %1128 = vmatpush.msra.mxu3 %v611_v26  ;;  %616 = vmatpush.msra.mxu1 %v611_v26  ;;  %v605_v40 = vld [vmem:[#allocation8 + $0x38] sm:$0xff]  ;;  %v603_v42 = vld [vmem:[#allocation8 + $0x28] sm:$0xff]  ;;  %v602_v43 = vld [vmem:[#allocation8 + $0x20] sm:$0xff] }
  0x68   : > { %405 = vmatpush.msra.mxu0 %v386_v7  ;;  %1117 = vmatpush.msra.mxu2 %v386_v7  ;;  %v601_v44 = vld [vmem:[#allocation8 + $0x18] sm:$0xff]  ;;  %v600_v45 = vld [vmem:[#allocation8 + $0x10] sm:$0xff]  ;;  %v599_v46 = vld [vmem:[#allocation8 + $0x8] sm:$0xff] }
  0x69   : > { %1129 = vmatpush.msra.mxu3 %v610_v27  ;;  %617 = vmatpush.msra.mxu1 %v610_v27  ;;  %v598_v47 = vld [vmem:[#allocation8] sm:$0xff] }
  0x6a   : > { %406 = vmatpush.msra.mxu0 %v385_v8  ;;  %1118 = vmatpush.msra.mxu2 %v385_v8  ;;  %v1768_v48 = vld [vmem:[%s2038_s2] ss:$0 sm:$0xff] }
  0x6b   : > { %1130 = vmatpush.msra.mxu3 %v609_v30  ;;  %618 = vmatpush.msra.mxu1 %v609_v30  ;;  %v1774_v52 = vld [vmem:[%s2040_s4] ss:$0 sm:$0xff] }
  0x6c   : > { %407 = vmatpush.msra.mxu0 %v384_v9  ;;  %1119 = vmatpush.msra.mxu2 %v384_v9 }
  0x6d   : > { %1131 = vmatpush.msra.mxu3 %v608_v31  ;;  %619 = vmatpush.msra.mxu1 %v608_v31 }
  0x6e   : > { %408 = vmatpush.msra.mxu0 %v383_v10  ;;  %1120 = vmatpush.msra.mxu2 %v383_v10 }
  0x6f   : > { %1132 = vmatpush.msra.mxu3 %v607_v38  ;;  %620 = vmatpush.msra.mxu1 %v607_v38 }
  0x70   : > { %409 = vmatpush.msra.mxu0 %v382_v11  ;;  %1121 = vmatpush.msra.mxu2 %v382_v11 }
  0x71   : > { %1133 = vmatpush.msra.mxu3 %v606_v39  ;;  %621 = vmatpush.msra.mxu1 %v606_v39 }
  0x72   : > { %410 = vmatpush.msra.mxu0 %v381_v12  ;;  %1122 = vmatpush.msra.mxu2 %v381_v12 }
  0x73   : > { %1134 = vmatpush.msra.mxu3 %v605_v40  ;;  %622 = vmatpush.msra.mxu1 %v605_v40 }
  0x74   : > { %411 = vmatpush.msra.mxu0 %v380_v13  ;;  %1123 = vmatpush.msra.mxu2 %v380_v13 }
  0x75   : > { %1135 = vmatpush.msra.mxu3 %v604_v41  ;;  %623 = vmatpush.msra.mxu1 %v604_v41 }
  0x76   : > { %412 = vmatpush.msra.mxu0 %v379_v14  ;;  %1124 = vmatpush.msra.mxu2 %v379_v14 }
  0x77   : > { %1136 = vmatpush.msra.mxu3 %v603_v42  ;;  %624 = vmatpush.msra.mxu1 %v603_v42 }
  0x78   : > { %413 = vmatpush.msra.mxu0 %v378_v15  ;;  %1125 = vmatpush.msra.mxu2 %v378_v15 }
  0x79   : > { %414 = vmatmul.f32.vlgmr.msra.gmra.mxu0 %v362_v16  ;;  %438 = vmatmul.f32.vlgmr.msra.gmra.mxu2 %v370_v17 }
  0x7a   : > { %1137 = vmatpush.msra.mxu3 %v602_v43  ;;  %625 = vmatpush.msra.mxu1 %v602_v43 }
  0x7c   : > { %1138 = vmatpush.msra.mxu3 %v601_v44  ;;  %626 = vmatpush.msra.mxu1 %v601_v44 }
  0x7e   : > { %1139 = vmatpush.msra.mxu3 %v600_v45  ;;  %627 = vmatpush.msra.mxu1 %v600_v45 }
  0x80   : > { %1140 = vmatpush.msra.mxu3 %v599_v46  ;;  %628 = vmatpush.msra.mxu1 %v599_v46 }
  0x81   : > { %417 = vmatmul.f32.gmra.mxu0 %v363_v18  ;;  %441 = vmatmul.f32.gmra.mxu2 %v371_v19 }
  0x82   : > { %1141 = vmatpush.msra.mxu3 %v598_v47  ;;  %629 = vmatpush.msra.mxu1 %v598_v47 }
  0x89   : > { %420 = vmatmul.f32.gmra.mxu0 %v364_v20  ;;  %444 = vmatmul.f32.gmra.mxu2 %v372_v21 }
  0x91   : > { %423 = vmatmul.f32.gmra.mxu0 %v365_v22  ;;  %447 = vmatmul.f32.gmra.mxu2 %v373_v23 }
  0x99   : > { %426 = vmatmul.f32.gmra.mxu0 %v366_v28  ;;  %450 = vmatmul.f32.gmra.mxu2 %v374_v29 }
  0xa1   : > { %429 = vmatmul.f32.gmra.mxu0 %v367_v32  ;;  %453 = vmatmul.f32.gmra.mxu2 %v375_v33 }
  0xa9   : > { %432 = vmatmul.f32.gmra.mxu0 %v368_v34  ;;  %456 = vmatmul.f32.gmra.mxu2 %v376_v35 }
  0xb1   : > { %435 = vmatmul.f32.gmra.mxu0 %v369_v36  ;;  %459 = vmatmul.f32.gmra.mxu2 %v377_v37 }
  0xf6   : > { %v415_v49 = vpop.f32.mrf.mxu0 }
  0xf7   : > { %v416_v50 = vadd.f32 %v1768_v48, %v415_v49 }
  0xf9   : > { %1274 = vtanh.f32 %v416_v50 }
  0xfc   : > { %v439_v51 = vpop.f32.mrf.mxu2 }
  0xfd   : > { %v440_v53 = vadd.f32 %v1768_v48, %v439_v51 }
  0xfe   : > { %v418_v54 = vpop.f32.mrf.mxu0 }
  0xff   : > { %v1275_v55 = vpop.eup %1274  ;;  %1276 = vtanh.f32 %v440_v53  ;;  %v419_v56 = vadd.f32 %v1768_v48, %v418_v54 }
 0x100   : > { %v483_v57 = vmul.f32 %v1275_v55, %v1774_v52  ;;  %v566_v58 = vmul.f32 %v1275_v55, %v1275_v55 }
 0x101   : > { %1278 = vtanh.f32 %v419_v56 }
 0x102   : > { %499 = vadd.xlane.f32.xlu0 %v483_v57  ;;  %v582_v59 = vsub.f32 1.0, %v566_v58 }
 0x104   : > { %v442_v60 = vpop.f32.mrf.mxu2  ;;  %630 = vmatmul.f32.vlgmr.msra.gmra.mxu1 %v582_v59 }
 0x105   : > { %v1277_v61 = vpop.eup %1276  ;;  %v443_v62 = vadd.f32 %v1768_v48, %v442_v60 }
 0x106   : > { %v421_v63 = vpop.f32.mrf.mxu0  ;;  %v491_v0 = vmul.f32 %v1277_v61, %v1774_v52  ;;  %v574_v1 = vmul.f32 %v1277_v61, %v1277_v61 }
 0x107   : > { %v1279_v2 = vpop.eup %1278  ;;  %1280 = vtanh.f32 %v443_v62  ;;  %v422_v3 = vadd.f32 %v1768_v48, %v421_v63 }
 0x108   : > { %515 = vadd.xlane.f32.xlu2 %v491_v0  ;;  %v590_v4 = vsub.f32 1.0, %v574_v1  ;;  %v484_v5 = vmul.f32 %v1279_v2, %v1774_v52  ;;  %v567_v6 = vmul.f32 %v1279_v2, %v1279_v2 }
 0x109   : > { %1282 = vtanh.f32 %v422_v3 }
 0x10a   : > { %654 = vmatmul.f32.vlgmr.msra.gmra.mxu3 %v590_v4  ;;  %501 = vadd.xlane.f32.xlu0 %v484_v5  ;;  %v583_v7 = vsub.f32 1.0, %v567_v6 }
 0x10c   : > { %v445_v8 = vpop.f32.mrf.mxu2  ;;  %633 = vmatmul.f32.gmra.mxu1 %v583_v7 }
 0x10d   : > { %v1281_v9 = vpop.eup %1280  ;;  %v446_v10 = vadd.f32 %v1768_v48, %v445_v8 }
 0x10e   : > { %v424_v11 = vpop.f32.mrf.mxu0  ;;  %v575_v12 = vmul.f32 %v1281_v9, %v1281_v9  ;;  %v492_v18 = vmul.f32 %v1281_v9, %v1774_v52 }
 0x10f   : > { %v1283_v13 = vpop.eup %1282  ;;  %1284 = vtanh.f32 %v446_v10  ;;  %v425_v14 = vadd.f32 %v1768_v48, %v424_v11 }
 0x110   : > { %v591_v15 = vsub.f32 1.0, %v575_v12  ;;  %v485_v16 = vmul.f32 %v1283_v13, %v1774_v52  ;;  %v568_v17 = vmul.f32 %v1283_v13, %v1283_v13 }
 0x111   : > { %1286 = vtanh.f32 %v425_v14 }
 0x112   : > { %657 = vmatmul.f32.gmra.mxu3 %v591_v15  ;;  %503 = vadd.xlane.f32.xlu1 %v485_v16  ;;  %v584_v19 = vsub.f32 1.0, %v568_v17 }
 0x113   : > { %517 = vadd.xlane.f32.xlu0 %v492_v18 }
 0x114   : > { %v448_v20 = vpop.f32.mrf.mxu2  ;;  %636 = vmatmul.f32.gmra.mxu1 %v584_v19  ;;  %v1807_v19 = vstv %s531_s24 }
 0x115   : > { %v1285_v21 = vpop.eup %1284  ;;  %v449_v22 = vadd.f32 %v1768_v48, %v448_v20 }
 0x116   : > { %v427_v23 = vpop.f32.mrf.mxu0  ;;  %v576_v24 = vmul.f32 %v1285_v21, %v1285_v21  ;;  %v493_v28 = vmul.f32 %v1285_v21, %v1774_v52 }
 0x117   : > { %v1287_v25 = vpop.eup %1286  ;;  %1288 = vtanh.f32 %v449_v22  ;;  %v428_v26 = vadd.f32 %v1768_v48, %v427_v23 }
 0x118   : > { %v592_v27 = vsub.f32 1.0, %v576_v24  ;;  %v569_v29 = vmul.f32 %v1287_v25, %v1287_v25  ;;  %v486_v37 = vmul.f32 %v1287_v25, %v1774_v52 }
 0x119   : > { %1290 = vtanh.f32 %v428_v26 }
 0x11a   : > { %660 = vmatmul.f32.gmra.mxu3 %v592_v27  ;;  %519 = vadd.xlane.f32.xlu1 %v493_v28  ;;  %v585_v30 = vsub.f32 1.0, %v569_v29 }
 0x11c   : > { %v451_v31 = vpop.f32.mrf.mxu2  ;;  %639 = vmatmul.f32.gmra.mxu1 %v585_v30 }
 0x11d   : > { %v1289_v32 = vpop.eup %1288  ;;  %v452_v33 = vadd.f32 %v1768_v48, %v451_v31 }
 0x11e   : > { %v430_v34 = vpop.f32.mrf.mxu0  ;;  %v494_v35 = vmul.f32 %v1289_v32, %v1774_v52  ;;  %v577_v36 = vmul.f32 %v1289_v32, %v1289_v32 }
 0x11f   : > { %v1291_v38 = vpop.eup %1290  ;;  %1292 = vtanh.f32 %v452_v33  ;;  %v431_v39 = vadd.f32 %v1768_v48, %v430_v34 }
 0x120   : > { %521 = vadd.xlane.f32.xlu2 %v494_v35  ;;  %v593_v40 = vsub.f32 1.0, %v577_v36  ;;  %v570_v41 = vmul.f32 %v1291_v38, %v1291_v38  ;;  %v487_v44 = vmul.f32 %v1291_v38, %v1774_v52 }
 0x121   : > { %1294 = vtanh.f32 %v431_v39 }
 0x122   : > { %663 = vmatmul.f32.gmra.mxu3 %v593_v40  ;;  %505 = vadd.xlane.f32.xlu1 %v486_v37  ;;  %v586_v42 = vsub.f32 1.0, %v570_v41 }
 0x124   : > { %v454_v43 = vpop.f32.mrf.mxu2  ;;  %642 = vmatmul.f32.gmra.mxu1 %v586_v42 }
 0x125   : > { %v1293_v45 = vpop.eup %1292  ;;  %v455_v46 = vadd.f32 %v1768_v48, %v454_v43 }
 0x126   : > { %v433_v47 = vpop.f32.mrf.mxu0  ;;  %v495_v49 = vmul.f32 %v1293_v45, %v1774_v52  ;;  %v578_v50 = vmul.f32 %v1293_v45, %v1293_v45 }
 0x127   : > { %v1295_v51 = vpop.eup %1294  ;;  %1296 = vtanh.f32 %v455_v46  ;;  %v434_v53 = vadd.f32 %v1768_v48, %v433_v47 }
 0x128   : > { %507 = vadd.xlane.f32.xlu2 %v487_v44  ;;  %523 = vadd.xlane.f32.xlu0 %v495_v49  ;;  %v594_v54 = vsub.f32 1.0, %v578_v50  ;;  %v571_v55 = vmul.f32 %v1295_v51, %v1295_v51  ;;  %v488_v58 = vmul.f32 %v1295_v51, %v1774_v52 }
 0x129   : > { %1298 = vtanh.f32 %v434_v53 }
 0x12a   : > { %666 = vmatmul.f32.gmra.mxu3 %v594_v54  ;;  %v587_v56 = vsub.f32 1.0, %v571_v55 }
 0x12c   : > { %v457_v57 = vpop.f32.mrf.mxu2  ;;  %645 = vmatmul.f32.gmra.mxu1 %v587_v56 }
 0x12d   : > { %v1297_v59 = vpop.eup %1296  ;;  %v458_v60 = vadd.f32 %v1768_v48, %v457_v57 }
 0x12e   : > { %v436_v61 = vpop.f32.mrf.mxu0  ;;  %v579_v62 = vmul.f32 %v1297_v59, %v1297_v59  ;;  %v496_v18 = vmul.f32 %v1297_v59, %v1774_v52 }
 0x12f   : > { %v1299_v63 = vpop.eup %1298  ;;  %1300 = vtanh.f32 %v458_v60  ;;  %v437_v0 = vadd.f32 %v1768_v48, %v436_v61 }
 0x130   : > { %509 = vadd.xlane.f32.xlu2 %v488_v58  ;;  %v595_v1 = vsub.f32 1.0, %v579_v62  ;;  %v489_v2 = vmul.f32 %v1299_v63, %v1774_v52  ;;  %v572_v3 = vmul.f32 %v1299_v63, %v1299_v63 }
 0x131   : > { %1302 = vtanh.f32 %v437_v0 }
 0x132   : > { %669 = vmatmul.f32.gmra.mxu3 %v595_v1  ;;  %511 = vadd.xlane.f32.xlu0 %v489_v2  ;;  %v588_v4 = vsub.f32 1.0, %v572_v3 }
 0x134   : > { %v460_v5 = vpop.f32.mrf.mxu2  ;;  %648 = vmatmul.f32.gmra.mxu1 %v588_v4 }
 0x135   : > { %v1301_v6 = vpop.eup %1300  ;;  %v461_v7 = vadd.f32 %v1768_v48, %v460_v5 }
 0x136   : > { %v497_v8 = vmul.f32 %v1301_v6, %v1774_v52  ;;  %v580_v9 = vmul.f32 %v1301_v6, %v1301_v6 }
 0x137   : > { %v1303_v10 = vpop.eup %1302  ;;  %1304 = vtanh.f32 %v461_v7 }
 0x138   : > { %527 = vadd.xlane.f32.xlu2 %v497_v8  ;;  %v596_v11 = vsub.f32 1.0, %v580_v9  ;;  %v490_v12 = vmul.f32 %v1303_v10, %v1774_v52  ;;  %v573_v13 = vmul.f32 %v1303_v10, %v1303_v10 }
 0x13a   : > { %672 = vmatmul.f32.gmra.mxu3 %v596_v11  ;;  %513 = vadd.xlane.f32.xlu1 %v490_v12  ;;  %v589_v14 = vsub.f32 1.0, %v573_v13 }
 0x13c   : > { %651 = vmatmul.f32.gmra.mxu1 %v589_v14 }
 0x13d   : > { %v1305_v15 = vpop.eup %1304 }
 0x13e   : > { %v498_v16 = vmul.f32 %v1305_v15, %v1774_v52  ;;  %v581_v17 = vmul.f32 %v1305_v15, %v1305_v15 }
 0x140   : > { %529 = vadd.xlane.f32.xlu0 %v498_v16  ;;  %v597_v48 = vsub.f32 1.0, %v581_v17 }
 0x142   : > { %675 = vmatmul.f32.gmra.mxu3 %v597_v48  ;;  %525 = vadd.xlane.f32.xlu1 %v496_v18 }
 0x175   : > { %v500_v20 = vpop.xlane.xlu0 %499 }
 0x176   : > { %v533_v21 = vadd.f32 %v1807_v19, %v500_v20 }
 0x178   : > { %550 = vst.msk [vmem:[%s1811_s12] sm:$0xff] %vm549_vm0, %v533_v21 }
 0x17b   : > { %v516_v52 = vpop.xlane.xlu2 %515 }
 0x17c   : > { %v541_v22 = vadd.f32 %v1807_v19, %v516_v52 }
 0x17d   : > { %v502_v23 = vpop.xlane.xlu0 %501 }
 0x17e   : > { %558 = vst.msk [vmem:[%s1811_s12 + $0x40] sm:$0xff] %vm549_vm0, %v541_v22  ;;  %v534_v24 = vadd.f32 %v1807_v19, %v502_v23 }
 0x180   : > { %551 = vst.msk [vmem:[%s1811_s12 + $0x8] sm:$0xff] %vm549_vm0, %v534_v24 }
 0x181   : > { %v631_v25 = vpop.f32.mrf.mxu1 }
 0x182   : > { %679 = vst [vmem:[%s1822_s17] sm:$0xff] %v631_v25 }
 0x185   : > { %v504_v26 = vpop.xlane.xlu1 %503 }
 0x186   : > { %v535_v27 = vadd.f32 %v1807_v19, %v504_v26  ;;  %v518_v28 = vpop.xlane.xlu0 %517 }
 0x187   : > { %v542_v29 = vadd.f32 %v1807_v19, %v518_v28 }
 0x188   : > { %552 = vst.msk [vmem:[%s1811_s12 + $0x10] sm:$0xff] %vm549_vm0, %v535_v27 }
 0x189   : > { %559 = vst.msk [vmem:[%s1811_s12 + $0x48] sm:$0xff] %vm549_vm0, %v542_v29  ;;  %v634_v30 = vpop.f32.mrf.mxu1 }
 0x18a   : > { %680 = vst [vmem:[%s1822_s17 + $0x8] sm:$0xff] %v634_v30 }
 0x18d   : > { %v655_v31 = vpop.f32.mrf.mxu3  ;;  %v520_v32 = vpop.xlane.xlu1 %519 }
 0x18e   : > { %687 = vst [vmem:[%s1822_s17 + $0x40] sm:$0xff] %v655_v31  ;;  %v543_v33 = vadd.f32 %v1807_v19, %v520_v32 }
 0x190   : > { %560 = vst.msk [vmem:[%s1811_s12 + $0x50] sm:$0xff] %vm549_vm0, %v543_v33 }
 0x191   : > { %v637_v34 = vpop.f32.mrf.mxu1 }
 0x192   : > { %681 = vst [vmem:[%s1822_s17 + $0x10] sm:$0xff] %v637_v34 }
 0x193   : > { %v522_v35 = vpop.xlane.xlu2 %521 }
 0x194   : > { %v544_v36 = vadd.f32 %v1807_v19, %v522_v35 }
 0x195   : > { %v658_v37 = vpop.f32.mrf.mxu3  ;;  %v506_v38 = vpop.xlane.xlu1 %505 }
 0x196   : > { %561 = vst.msk [vmem:[%s1811_s12 + $0x58] sm:$0xff] %vm549_vm0, %v544_v36  ;;  %v536_v39 = vadd.f32 %v1807_v19, %v506_v38 }
 0x197   : > { %688 = vst [vmem:[%s1822_s17 + $0x48] sm:$0xff] %v658_v37 }
 0x198   : > { %553 = vst.msk [vmem:[%s1811_s12 + $0x18] sm:$0xff] %vm549_vm0, %v536_v39 }
 0x199   : > { %v640_v40 = vpop.f32.mrf.mxu1 }
 0x19a   : > { %682 = vst [vmem:[%s1822_s17 + $0x18] sm:$0xff] %v640_v40 }
 0x19b   : > { %v508_v41 = vpop.xlane.xlu2 %507  ;;  %v524_v42 = vpop.xlane.xlu0 %523 }
 0x19c   : > { %v537_v43 = vadd.f32 %v1807_v19, %v508_v41  ;;  %v545_v44 = vadd.f32 %v1807_v19, %v524_v42 }
 0x19d   : > { %v661_v45 = vpop.f32.mrf.mxu3 }
 0x19e   : > { %554 = vst.msk [vmem:[%s1811_s12 + $0x20] sm:$0xff] %vm549_vm0, %v537_v43 }
 0x19f   : > { %562 = vst.msk [vmem:[%s1811_s12 + $0x60] sm:$0xff] %vm549_vm0, %v545_v44 }
 0x1a0   : > { %689 = vst [vmem:[%s1822_s17 + $0x50] sm:$0xff] %v661_v45 }
 0x1a1   : > { %v643_v46 = vpop.f32.mrf.mxu1 }
 0x1a2   : > { %683 = vst [vmem:[%s1822_s17 + $0x20] sm:$0xff] %v643_v46 }
 0x1a3   : > { %v510_v47 = vpop.xlane.xlu2 %509 }
 0x1a4   : > { %v538_v49 = vadd.f32 %v1807_v19, %v510_v47 }
 0x1a5   : > { %v664_v50 = vpop.f32.mrf.mxu3  ;;  %v512_v51 = vpop.xlane.xlu0 %511 }
 0x1a6   : > { %555 = vst.msk [vmem:[%s1811_s12 + $0x28] sm:$0xff] %vm549_vm0, %v538_v49  ;;  %v539_v53 = vadd.f32 %v1807_v19, %v512_v51 }
 0x1a7   : > { %690 = vst [vmem:[%s1822_s17 + $0x58] sm:$0xff] %v664_v50 }
 0x1a8   : > { %556 = vst.msk [vmem:[%s1811_s12 + $0x30] sm:$0xff] %vm549_vm0, %v539_v53 }
 0x1a9   : > { %v646_v54 = vpop.f32.mrf.mxu1 }
 0x1aa   : > { %684 = vst [vmem:[%s1822_s17 + $0x28] sm:$0xff] %v646_v54 }
 0x1ab   : > { %v528_v55 = vpop.xlane.xlu2 %527 }
 0x1ac   : > { %v547_v56 = vadd.f32 %v1807_v19, %v528_v55 }
 0x1ad   : > { %v667_v57 = vpop.f32.mrf.mxu3  ;;  %v514_v58 = vpop.xlane.xlu1 %513 }
 0x1ae   : > { %564 = vst.msk [vmem:[%s1811_s12 + $0x70] sm:$0xff] %vm549_vm0, %v547_v56  ;;  %v540_v59 = vadd.f32 %v1807_v19, %v514_v58 }
 0x1af   : > { %691 = vst [vmem:[%s1822_s17 + $0x60] sm:$0xff] %v667_v57 }
 0x1b0   : > { %557 = vst.msk [vmem:[%s1811_s12 + $0x38] sm:$0xff] %vm549_vm0, %v540_v59 }
 0x1b1   : > { %v649_v60 = vpop.f32.mrf.mxu1 }
 0x1b2   : > { %685 = vst [vmem:[%s1822_s17 + $0x30] sm:$0xff] %v649_v60 }
 0x1b3   : > { %v530_v61 = vpop.xlane.xlu0 %529 }
 0x1b4   : > { %v548_v62 = vadd.f32 %v1807_v19, %v530_v61 }
 0x1b5   : > { %v670_v63 = vpop.f32.mrf.mxu3  ;;  %v526_v0 = vpop.xlane.xlu1 %525 }
 0x1b6   : > { %565 = vst.msk [vmem:[%s1811_s12 + $0x78] sm:$0xff] %vm549_vm0, %v548_v62  ;;  %v546_v1 = vadd.f32 %v1807_v19, %v526_v0 }
 0x1b7   : > { %692 = vst [vmem:[%s1822_s17 + $0x68] sm:$0xff] %v670_v63 }
 0x1b8   : > { %563 = vst.msk [vmem:[%s1811_s12 + $0x68] sm:$0xff] %vm549_vm0, %v546_v1 }
 0x1b9   : > { %v652_v2 = vpop.f32.mrf.mxu1 }
 0x1ba   : > { %686 = vst [vmem:[%s1822_s17 + $0x38] sm:$0xff] %v652_v2 }
 0x1bd   : > { %v673_v3 = vpop.f32.mrf.mxu3 }
 0x1be   : > { %693 = vst [vmem:[%s1822_s17 + $0x70] sm:$0xff] %v673_v3 }
 0x1c2   : > { %706 = sbr.rel (!%p1657_p11) target bundleno = 503 (0x1f7), region = 60 }
 0x1c5   : > { %v676_v4 = vpop.f32.mrf.mxu3 }
 0x1c6   : > { %694 = vst [vmem:[%s1822_s17 + $0x78] sm:$0xff] %v676_v4 }
 0x1c7   : > { %s2079_s21 = smov (!%p709_p6, %s708_s21), 16 }
 0x1c8   : > { %s1084_s19 = sshll.u32 %s2079_s21, 3 }
 0x1c9   : > { %p1087_p13 = scmp.eq.s32.totalorder %s1084_s19, 0 }
 0x1ca   : > { %s1893_s10 = sshrl.u32 (!%p1087_p13), %s2079_s21, 4 }
 0x1cb   : > { %717 = sbr.rel (%p1087_p13) target bundleno = 503 (0x1f7), region = 64  ;;  %p1088_p2 = scmp.le.s32.totalorder (!%p1087_p13), %s1893_s10, 0 }
 0x1d0   : > { %989 = sbr.rel (%p1088_p2) target bundleno = 486 (0x1e6), region = 163  ;;  %s2062_s1 = smov (!%p1088_p2), %s1887_s20 }
 0x1d1   : > { %s2063_s13 = smov (!%p1088_p2), %s1811_s12  ;;  %s1902_s16 = smov (!%p1088_p2), 0  }
 0x1d2   : > { %s1904_s22 = smov (!%p1088_p2), 0  }
 0x1d5 LB: >> { %v810_v5 = vld [vmem:[%s1526_s13] sm:$0xff]  ;;  %v812_v6 = vld [vmem:[%s1526_s13 + $0x8] sm:$0xff]  ;;  %v814_v7 = vld [vmem:[%s1526_s13 + $0x10] sm:$0xff]  ;;  %s842_s24 = sadd.s32 1, %s1530_s16  ;;  %s804_s22 = sadd.s32 1, %s1534_s22   ;;  %s1534_s22 = sphi %s1904_s22, %s804_s22   ;;  %s1530_s16 = sphi %s1902_s16, %s2066_s16   ;;  %s1526_s13 = sphi %s2063_s13, %s2065_s13   ;;  %s1522_s1 = sphi %s2062_s1, %s2064_s1  }
 0x1d6   : >> { %811 = vst [vmem:[%s1522_s1] sm:$0xff] %v810_v5  ;;  %v816_v8 = vld [vmem:[%s1526_s13 + $0x18] sm:$0xff]  ;;  %p843_p5 = scmp.ge.s32.totalorder %s842_s24, %s1893_s10  ;;  %v818_v9 = vld [vmem:[%s1526_s13 + $0x20] sm:$0xff]  ;;  %v820_v10 = vld [vmem:[%s1526_s13 + $0x28] sm:$0xff]  ;;  %p803_p9 = scmp.ge.s32.totalorder %s804_s22, %s1893_s10 }
 0x1d7   : >> { %813 = vst [vmem:[%s1522_s1 + $0x8] sm:$0xff] %v812_v6  ;;  %v822_v11 = vld [vmem:[%s1526_s13 + $0x30] sm:$0xff]  ;;  %v824_v12 = vld [vmem:[%s1526_s13 + $0x38] sm:$0xff]  ;;  %v826_v13 = vld [vmem:[%s1526_s13 + $0x40] sm:$0xff] }
 0x1d8   : >> { %815 = vst [vmem:[%s1522_s1 + $0x10] sm:$0xff] %v814_v7  ;;  %s2081_s24 = smov (%p843_p5, %s842_s24), 0  ;;  %v828_v14 = vld [vmem:[%s1526_s13 + $0x48] sm:$0xff]  ;;  %v830_v15 = vld [vmem:[%s1526_s13 + $0x50] sm:$0xff]  ;;  %v832_v16 = vld [vmem:[%s1526_s13 + $0x58] sm:$0xff] }
 0x1d9   : >> { %817 = vst [vmem:[%s1522_s1 + $0x18] sm:$0xff] %v816_v8  ;;  %s1089_s9 = sshll.u32 %s2081_s24, 7  ;;  %v834_v17 = vld [vmem:[%s1526_s13 + $0x60] sm:$0xff]  ;;  %v836_v48 = vld [vmem:[%s1526_s13 + $0x68] sm:$0xff]  ;;  %v838_v18 = vld [vmem:[%s1526_s13 + $0x70] sm:$0xff]  ;;  %s2066_s16 = smov %s2081_s24 }
 0x1da   : >> { %819 = vst [vmem:[%s1522_s1 + $0x20] sm:$0xff] %v818_v9  ;;  %s847_s30 = scalar_lea.vmem %s1811_s12, %s1089_s9 [#allocation9]   ;;  %s848_s23 = scalar_lea.vmem %s1887_s20, %s1089_s9   ;;  %v840_v19 = vld [vmem:[%s1526_s13 + $0x78] sm:$0xff] }
 0x1db   : >> { %821 = vst [vmem:[%s1522_s1 + $0x28] sm:$0xff] %v820_v10  ;;  %s2065_s13 = smov %s847_s30 }
 0x1dc   : >> { %823 = vst [vmem:[%s1522_s1 + $0x30] sm:$0xff] %v822_v11 }
 0x1dd   : >> { %825 = vst [vmem:[%s1522_s1 + $0x38] sm:$0xff] %v824_v12 }
 0x1de   : >> { %827 = vst [vmem:[%s1522_s1 + $0x40] sm:$0xff] %v826_v13 }
 0x1df   : >> { %829 = vst [vmem:[%s1522_s1 + $0x48] sm:$0xff] %v828_v14 }
 0x1e0   : >> { %831 = vst [vmem:[%s1522_s1 + $0x50] sm:$0xff] %v830_v15 }
 0x1e1   : >> { %833 = vst [vmem:[%s1522_s1 + $0x58] sm:$0xff] %v832_v16  ;;  %806 = sbr.rel (!%p803_p9) target bundleno = 469 (0x1d5), region = 169 }
 0x1e2   : >> { %835 = vst [vmem:[%s1522_s1 + $0x60] sm:$0xff] %v834_v17 }
 0x1e3   : >> { %837 = vst [vmem:[%s1522_s1 + $0x68] sm:$0xff] %v836_v48 }
 0x1e4   : >> { %839 = vst [vmem:[%s1522_s1 + $0x70] sm:$0xff] %v838_v18 }
 0x1e5   : >> { %841 = vst [vmem:[%s1522_s1 + $0x78] sm:$0xff] %v840_v19  ;;  %s2064_s1 = smov %s848_s23 }
 0x1e6 PF: > { %s1966_s25 = sand.u32 15, %s2079_s21   ;;  %s1107_s19 = sshll.u32 %s1893_s10, 7 }
 0x1e7   : > { %s853_s9 = scalar_lea.vmem %s1811_s12, %s1107_s19 [#allocation9]   ;;  %s855_s18 = scalar_lea.vmem %s1887_s20, %s1107_s19  }
 0x1e8   : > { %p1094_p10 = scmp.le.s32.totalorder %s1966_s25, 0 }
 0x1e9   : > { %s1536_s23 = smov (!%p1094_p10), %s855_s18   ;;  %s1540_s30 = smov (!%p1094_p10), %s853_s9  }
 0x1ea   : > { %1003 = sbr.rel (%p1094_p10) target bundleno = 503 (0x1f7), region = 174  ;;  %s1544_s0 = smov (!%p1094_p10), 0  }
 0x1eb   : > { %s1548_s24 = smov (!%p1094_p10), 0  }
 0x1ef LB: >> { %v865_v20 = vld [vmem:[%s1542_s30] sm:$0xff]  ;;  %s867_s21 = sadd.s32 1, %s1546_s0  ;;  %s859_s24 = sadd.s32 1, %s1550_s24   ;;  %s1550_s24 = sphi %s1548_s24, %s859_s24   ;;  %s1546_s0 = sphi %s1544_s0, %s1545_s0   ;;  %s1542_s30 = sphi %s1540_s30, %s872_s30   ;;  %s1538_s23 = sphi %s1536_s23, %s873_s23  }
 0x1f0   : >> { %866 = vst [vmem:[%s1538_s23] sm:$0xff] %v865_v20  ;;  %p868_p1 = scmp.ge.s32.totalorder %s867_s21, %s1966_s25  ;;  %p858_p0 = scmp.ge.s32.totalorder %s859_s24, %s1966_s25 }
 0x1f2   : >> { %s2083_s21 = smov (%p868_p1, %s867_s21), 0  ;;  %861 = sbr.rel (!%p858_p0) target bundleno = 495 (0x1ef), region = 180 }
 0x1f3   : >> { %s1095_s12 = sshll.u32 %s2083_s21, 3  ;;  %s1545_s0 = smov %s2083_s21  }
 0x1f4   : >> { %s872_s30 = scalar_lea.vmem %s853_s9, %s1095_s12 [#allocation9]   ;;  %s873_s23 = scalar_lea.vmem %s855_s18, %s1095_s12  }
 0x1f7 PF: > { %879 = sbr.rel (!%p1657_p11) target bundleno = 540 (0x21c), region = 112  ;;  %s1097_s0 = sshll.u32 (%p1657_p11), %s1626_s5, 4 }
 0x1f8   : > { %s881_s20 = ssub.s32 (%p1657_p11), 25, %s1097_s0  ;;  %s2067_s16 = scalar_lea.sflag (%p1657_p11), [#allocation5], %s1732_s3 }
 0x1f9   : > { %p882_p3 = scmp.lt.s32.totalorder (%p1657_p11), %s881_s20, 16 }
 0x1fc   : > { %s2085_s20 = smov (!%p882_p3, %s881_s20), 16 }
 0x1fd   : > { %s1098_s10 = sshll.u32 %s2085_s20, 3 }
 0x1fe   : > { %s885_s1 = ssub.s32 128, %s1098_s10 }
 0x1ff   : > { %s886_s13 = sshll.u32 %s885_s1, 4 }
 0x200   : > { %887 = vsyncadd %s2067_s16, %s886_s13  ;;  %p1982_p7 = scmp.ne.s32.totalorder %s1098_s10, 0  ;;  %s1109_s18 = sshll.u32 %s1626_s5, 7 }
 0x201   : > { %s890_s19 = scalar_lea.hbm %s2043_s7, %s1109_s18  ;;  %s892_s9 = sshll.u32 %s1822_s17, 4  ;;  %s1991_s9 = int_to_ptr.vmem [resolvable:$true] %s892_s9 }
 0x202   : > { %s894_s23 = sshll.u32 %s890_s19, 4  ;;  %s1102_s30 = sshll.u32 %s2085_s20, 7  ;;  %s1993_s23 = int_to_ptr.hbm [resolvable:$true] %s894_s23 }
 0x203   : > { %s1405_s24 = sshra.s32 %s1991_s9, 4  ;;  %s1407_s21 = sshrl.u32 %s1102_s30, 4  ;;  %s1406_s24 = int_to_ptr.vmem [resolvable:$true] %s1405_s24 }
 0x204   : > { %s1412_s12 = scalar_lea.vmem %s1406_s24, %s1407_s21  ;;  %s1559_s5 = smov [#allocation10]  }
 0x205   : > { %p1413_p11 = scmp.ne.s32.totalorder %s1406_s24, %s1412_s12  ;;  %s1416_s0 = scalar_lea.vmem %s1559_s5, 256 }
 0x206   : > { %p1418_p12 = scmp.lt.s32.totalorder %s1416_s0, %s1412_s12 }
 0x207   : > { %p1414_p8 = pnand %p1413_p11, %p1982_p7 }
 0x209   : > { %p1415_p4 = pneg %p1414_p8 }
 0x20b   : > { %p1420_p6 = pnand %p1418_p12, %p1415_p4 }
 0x20d   : > { %1423 = shalt.err (!%p1420_p6)
}
 0x20e   : > { %s1424_s17 = sshra.s32 %s1993_s23, 4  ;;  %s1435_s16 = scalar_lea.hbm %s2043_s7, 200  ;;  %s1425_s17 = int_to_ptr.hbm [resolvable:$true] %s1424_s17 }
 0x20f   : > { %s1431_s10 = scalar_lea.hbm %s1425_s17, %s1407_s21  ;;  %p1436_p9 = scmp.lt.s32.totalorder %s1425_s17, %s2043_s7 }
 0x210   : > { %p1432_p13 = scmp.ne.s32.totalorder %s1425_s17, %s1431_s10  ;;  %p1437_p10 = scmp.lt.s32.totalorder %s1435_s16, %s1431_s10 }
 0x212   : > { %p1433_p2 = pnand %p1432_p13, %p1982_p7  ;;  %p1438_p1 = por %p1437_p10, %p1436_p9 }
 0x214   : > { %p1434_p5 = pneg %p1433_p2 }
 0x216   : > { %p1439_p0 = pnand %p1438_p1, %p1434_p5 }
 0x218   : > { %1442 = shalt.err (!%p1439_p0)
}
 0x219   : > { %s1560_s25 = smov 128   ;;  %s1561_s19 = smov 8  }
 0x21a   : > { %s2069_s24 = scalar_lea.sflag [#allocation5], %s1732_s3 }
 0x21b   : > { %900 = dma.vmem_to_hbm [thread:$0]  (%p1982_p7), %s1991_s9, %s1102_s30, %s1993_s23, %s2069_s24, %s1560_s25, %s1560_s25, %s1561_s19  }
 0x21c PF: > { %s916_s21 = sand.u32 1, %s1506_s26   ;;  %p2070_p3 = scmp.ne.s32.totalorder %s2053_s15, 0 }
 0x21d   : > { %p2071_p11 = scmp.ge.s32.totalorder %s1518_s29, 2  ;;  %s917_s12 = scalar_lea.sflag [#allocation5], %s916_s21 }
 0x21f   : > { %p1160_p8 = pnand %p2071_p11, %p2070_p3 }
 0x221   : > { %p1161_p4 = pneg %p1160_p8 }
 0x223   : > { %1501 = dma.done.wait (%p1161_p4), %s917_s12, 2048  }
 0x224   : > { %1503 = vsyncadd (%p1161_p4), %s917_s12, 4294965248  ;;  %p23_p12 = scmp.ge.s32.totalorder %s1630_s8, 4   ;;  %s2072_s26 = smov %s1510_s27 }
 0x225   : > { %s2073_s27 = smov %s1514_s28  ;;  %s2074_s28 = smov %s1642_s11 }
 0x226   : > { %s2075_s29 = smov %s1630_s8  ;;  %25 = sbr.rel (!%p23_p12) target bundleno = 11 (0xb), region = 191 }
 0x22b   :  { %923 = vsyncpa [#allocation4], 1 }
 0x22c   :  { %925 = vsyncpa [#allocation4 + $0x1], 1 }
 0x22d   :  { %926 = vsyncpa [#allocation7], 1 }
 0x22e   :  { %927 = vsyncpa [#allocation5], 1 }
 0x22f   :  { %929 = vsyncpa [#allocation5 + $0x1], 1 }

</bundles_post_ra>
